<compile_context>
chip_gen: v5e
topology: v5e:2x2
jax: 0.10.0
libtpu: 0.0.40
codegen_flags: <defaults>
</compile_context>

<pallas_src>
import functools

import jax
import jax.numpy as jnp
from jax.experimental import pallas as pl
from jax.experimental.pallas import tpu as pltpu


# ------------------------- Pallas kernel -------------------------

def _window_attn_kernel(x_ref, wq_ref, wk_ref, wv_ref, wproj_ref,
                        bq_ref, bk_ref, bv_ref, bproj_ref, o_ref,
                        *, num_heads, n_w):
    # x_ref:     (TW*N_w, C) bf16 (TW windows of N_w tokens, flattened)
    # wq/wk/wv:  (nh, C, hd) bf16 (scale folded into wq)
    # wproj:     (nh, hd, C) bf16
    # bq/bk/bv:  (nh, 1, hd) f32  (scale folded into bq)
    # bproj:     (1, C)      f32
    # o_ref:     (TW*N_w, C)
    M, C = x_ref.shape
    nh = num_heads
    hd = C // nh
    tw = M // n_w
    mxu = wq_ref.dtype

    x2d = x_ref[...]                                            # (M, C) bf16

    # Output-projection accumulator initialized with the proj bias (f32).
    out = jnp.broadcast_to(bproj_ref[...], (M, C)).astype(jnp.float32)

    # Per-head attention.  Head-major weights make each head a free
    # leading-axis view: no lane slicing, no packed-bf16 sublane slicing and
    # no concatenates inside the kernel; all matmuls are 2-D or single-batch
    # 3-D (the canonical Mosaic-supported dot forms).
    for h in range(nh):
        # QKV projections for this head (M rows, K = C).
        q = jnp.dot(x2d, wq_ref[h], preferred_element_type=jnp.float32) + bq_ref[h]
        k = jnp.dot(x2d, wk_ref[h], preferred_element_type=jnp.float32) + bk_ref[h]
        v = jnp.dot(x2d, wv_ref[h], preferred_element_type=jnp.float32) + bv_ref[h]

        # (M, hd) -> (tw, n_w, hd): leading-dim split only.
        qb = q.reshape(tw, n_w, hd).astype(mxu)
        kb = k.reshape(tw, n_w, hd).astype(mxu)
        vb = v.reshape(tw, n_w, hd).astype(mxu)

        # Batched attention over the TW windows; head_dim contracted directly.
        s = jnp.einsum('bqd,bkd->bqk', qb, kb,
                       preferred_element_type=jnp.float32)      # (tw, n_w, n_w)
        # Numerically-stable softmax, f32 math; EUP reciprocal (no VALU divide).
        s = s - jnp.max(s, axis=-1, keepdims=True)
        p = jnp.exp(s)
        p = p * pl.reciprocal(jnp.sum(p, axis=-1, keepdims=True), approx=True)

        oh = jnp.einsum('bqk,bkd->bqd', p.astype(mxu), vb,
                        preferred_element_type=jnp.float32)     # (tw, n_w, hd)

        # Accumulate this head's slice of the output projection:
        # out += oh @ wproj[h]  (leading-axis weight view, M-row matmul).
        out = out + jnp.dot(oh.reshape(M, hd).astype(mxu), wproj_ref[h],
                            preferred_element_type=jnp.float32)

    # Lane-dense 2-D store (no trailing reshape).  TODO(synk): for C not a
    # multiple of 128 (toy C=32, Swin C=96/192/384) the store is still masked;
    # pad C at the wrapper only if profiling shows store-bound behavior.
    o_ref[...] = out.astype(o_ref.dtype)


# ------------------------- tiling helpers -------------------------

def _round_up(n, m):
    return (n + m - 1) // m * m


def _vmem_params():
    """Generation-aware (per-step VMEM budget, scoped vmem limit, multi-TC?)."""
    try:
        cap = pltpu.get_tpu_info().vmem_capacity_bytes
    except Exception:  # pragma: no cover - conservative fallback
        cap = 64 << 20
    if cap <= (64 << 20):                 # v7x-like: 64 MiB physical, 2 TCs
        return 20 << 20, 48 << 20, True
    return 48 << 20, 96 << 20, False      # v5e / v6e: 128 MiB physical, 1 TC


def _choose_window_tile(B_w, N_w, C, num_heads, per_step_budget):
    """Pick TW (windows per grid step)."""
    hd = C // num_heads
    ln = lambda n: _round_up(max(n, 1), 128)
    # Per-window VMEM (bytes): one head's intermediates live at a time
    # (per-head loop) + the persistent accumulator + double-buffered x (bf16)
    # and out (f32) blocks.  The N_w x N_w score tensor is modeled explicitly.
    per_head = (3 * N_w * ln(hd) * 4        # q/k/v  (f32)
                + 3 * N_w * ln(hd) * 2      # q/k/v  (bf16 copies)
                + 2 * N_w * ln(N_w) * 4     # s, p   (f32)
                + N_w * ln(hd) * 6)         # attn out (f32 + bf16)
    persistent = (N_w * ln(C) * 4           # output accumulator (f32)
                  + 2 * N_w * ln(C) * 2     # x block, bf16, double-buffered
                  + 2 * N_w * ln(C) * 4)    # out block, f32, double-buffered
    per_window = per_head + persistent
    # Target ~2K rows per projection matmul, capped by the VMEM budget.
    tw = max(1, 2048 // max(N_w, 1))
    tw = min(tw, max(1, per_step_budget // max(per_window, 1)))
    # Keep >= 2 grid steps where possible so a 2-TensorCore chip can shard the
    # "parallel" grid axis; no-op on single-TC v5e/v6e.
    if B_w >= 2:
        tw = min(tw, pl.cdiv(B_w, 2))
    return max(1, min(tw, B_w))


# ------------------------- pallas_call wrapper -------------------------

def _window_attention_pallas(x_win, wq, wk, wv, wproj, bq, bk, bv, bproj,
                             num_heads):
    """x_win: (B_w, N_w, C) windowed tokens -> (B_w, N_w, C)."""
    B_w, N_w, C = x_win.shape
    nh = num_heads
    hd = C // nh
    out_dtype = x_win.dtype

    per_step_budget, vmem_limit, multi_tc = _vmem_params()
    tw = _choose_window_tile(B_w, N_w, C, nh, per_step_budget)
    n_blocks = pl.cdiv(B_w, tw)
    # Even block count on 2-TC chips to avoid a 1-block / odd-block imbalance.
    if multi_tc and n_blocks > 1 and (n_blocks % 2):
        n_blocks += 1
    pad = n_blocks * tw - B_w

    # bf16 input: halves the x HBM->VMEM DMA and the double-buffered x block.
    x_win = x_win.astype(wq.dtype)
    if pad:
        # Padded (zero) windows compute garbage that is sliced off below.
        x_win = jnp.pad(x_win, ((0, pad), (0, 0), (0, 0)))
    # Lane-dense 2-D slab for the kernel I/O (leading-dim reshape, free).
    x_flat = x_win.reshape(n_blocks * tw * N_w, C)

    kernel = functools.partial(_window_attn_kernel, num_heads=nh, n_w=N_w)
    out = pl.pallas_call(
        kernel,
        out_shape=jax.ShapeDtypeStruct((n_blocks * tw * N_w, C), out_dtype),
        grid_spec=pltpu.PrefetchScalarGridSpec(
            num_scalar_prefetch=0,
            grid=(n_blocks,),
            in_specs=[
                pl.BlockSpec((tw * N_w, C), lambda i: (i, 0)),    # x (bf16)
                pl.BlockSpec((nh, C, hd), lambda i: (0, 0, 0)),   # wq (scaled)
                pl.BlockSpec((nh, C, hd), lambda i: (0, 0, 0)),   # wk
                pl.BlockSpec((nh, C, hd), lambda i: (0, 0, 0)),   # wv
                pl.BlockSpec((nh, hd, C), lambda i: (0, 0, 0)),   # wproj
                pl.BlockSpec((nh, 1, hd), lambda i: (0, 0, 0)),   # bq (scaled)
                pl.BlockSpec((nh, 1, hd), lambda i: (0, 0, 0)),   # bk
                pl.BlockSpec((nh, 1, hd), lambda i: (0, 0, 0)),   # bv
                pl.BlockSpec((1, C), lambda i: (0, 0)),           # bproj
            ],
            out_specs=pl.BlockSpec((tw * N_w, C), lambda i: (i, 0)),
        ),
        compiler_params=pltpu.CompilerParams(
            dimension_semantics=("parallel",),
            vmem_limit_bytes=vmem_limit),
    )(x_flat, wq, wk, wv, wproj, bq, bk, bv, bproj)

    out = out.reshape(n_blocks * tw, N_w, C)
    if pad:
        out = out[:B_w]
    return out


# ------------------------- JAX glue (partition / reverse) -------------------------

def window_partition(x, window_size):
    # x: (B, H, W, C) -> (num_windows*B, ws0, ws1, C)
    B, H, W, C = x.shape
    x = x.reshape(B, H // window_size[0], window_size[0],
                  W // window_size[1], window_size[1], C)
    x = jnp.transpose(x, (0, 1, 3, 2, 4, 5))
    return x.reshape(-1, window_size[0], window_size[1], C)


def window_reverse(windows, window_size, H, W):
    # windows: (num_windows*B, ws0, ws1, C) -> (B, H, W, C)
    B = windows.shape[0] // (H * W // window_size[0] // window_size[1])
    x = windows.reshape(B, H // window_size[0], W // window_size[1],
                        window_size[0], window_size[1], -1)
    x = jnp.transpose(x, (0, 1, 3, 2, 4, 5))
    return x.reshape(B, H, W, -1)


class WindowAttentionPallas:
    """Mirror of the PyTorch WindowAttention forward (rel_pos_spatial=False).

    # TODO(synk): COMPAT rel_pos_h / rel_pos_w params are declared but unused
    # in the reference forward pass; they are omitted here.
    """

    def __init__(self, dim, window_size, num_heads, key,
                 mxu_dtype=jnp.bfloat16):
        assert dim % num_heads == 0
        self.dim = dim
        self.window_size = window_size
        self.num_heads = num_heads
        head_dim = dim // num_heads
        self.scale = head_dim ** (-0.5)
        self.mxu_dtype = mxu_dtype

        k1, k2, k3, k4 = jax.random.split(key, 4)
        # Reference (f32) parameters, (in, out) layout: y = x @ W + b.
        self.wqkv = jax.random.normal(k1, (dim, 3 * dim), jnp.float32) * 0.05
        self.bqkv = jax.random.normal(k2, (1, 3 * dim), jnp.float32) * 0.05
        self.wproj = jax.random.normal(k3, (dim, dim), jnp.float32) * 0.05
        self.bproj = jax.random.normal(k4, (1, dim), jnp.float32) * 0.05

        # Kernel-ready parameters: head-major weights so the kernel indexes
        # heads on the leading axis (free view) instead of slicing lanes /
        # packed-bf16 sublanes; softmax scale folded into the Q weight/bias
        # (exact, zero runtime cost); MXU operands pre-cast to bf16 (biases
        # and all accumulation / softmax math stay f32).
        d, nh = dim, num_heads
        hd = d // nh
        wq = self.wqkv[:, 0 * d:1 * d] * self.scale
        wk = self.wqkv[:, 1 * d:2 * d]
        wv = self.wqkv[:, 2 * d:3 * d]
        self.wq_k = jnp.transpose(wq.reshape(d, nh, hd), (1, 0, 2)).astype(mxu_dtype)
        self.wk_k = jnp.transpose(wk.reshape(d, nh, hd), (1, 0, 2)).astype(mxu_dtype)
        self.wv_k = jnp.transpose(wv.reshape(d, nh, hd), (1, 0, 2)).astype(mxu_dtype)
        self.wp_k = self.wproj.reshape(nh, hd, d).astype(mxu_dtype)
        self.bq_k = (self.bqkv[:, 0 * d:1 * d] * self.scale).reshape(nh, 1, hd)
        self.bk_k = self.bqkv[:, 1 * d:2 * d].reshape(nh, 1, hd)
        self.bv_k = self.bqkv[:, 2 * d:3 * d].reshape(nh, 1, hd)
        self.bp_k = self.bproj

    def __call__(self, x, H, W):
        # x: (B_, N, C) with N = H * W
        B_, N, C = x.shape
        ws0, ws1 = self.window_size
        x = x.reshape(B_, H, W, C)

        pad_r = (ws1 - W % ws1) % ws1
        pad_b = (ws0 - H % ws0) % ws0
        x = jnp.pad(x, ((0, 0), (0, pad_b), (0, pad_r), (0, 0)))
        _, Hp, Wp, _ = x.shape

        x = window_partition(x, self.window_size)          # (B_w, ws0, ws1, C)
        x = x.reshape(-1, ws0 * ws1, C)                    # (B_w, N_w, C)

        x = _window_attention_pallas(
            x, self.wq_k, self.wk_k, self.wv_k, self.wp_k,
            self.bq_k, self.bk_k, self.bv_k, self.bp_k,
            self.num_heads)                                # (B_w, N_w, C)

        # NOTE: (-1, ws1, ws0, C) mirrors the original PyTorch code exactly
        # (x.view(-1, window_size[1], window_size[0], C)); identical to
        # (ws0, ws1) for square windows.
        x = x.reshape(-1, ws1, ws0, C)
        x = window_reverse(x, self.window_size, Hp, Wp)    # (B, Hp, Wp, C)
        if pad_r > 0 or pad_b > 0:
            x = x[:, :H, :W, :]
        return x.reshape(B_, H * W, C)


# ------------------------- pure-JAX f32 reference (for self-check) -------------------------

def _reference_forward(mod, x, H, W):
    B_, N, C = x.shape
    ws0, ws1 = mod.window_size
    nh = mod.num_heads
    hd = C // nh
    xi = x.reshape(B_, H, W, C)
    pad_r = (ws1 - W % ws1) % ws1
    pad_b = (ws0 - H % ws0) % ws0
    xi = jnp.pad(xi, ((0, 0), (0, pad_b), (0, pad_r), (0, 0)))
    _, Hp, Wp, _ = xi.shape
    xw = window_partition(xi, mod.window_size).reshape(-1, ws0 * ws1, C)
    B_w, N_w, _ = xw.shape
    qkv = (xw @ mod.wqkv + mod.bqkv[0]).reshape(B_w, N_w, 3, nh, hd)
    qkv = jnp.transpose(qkv, (2, 0, 3, 1, 4))
    q, k, v = qkv[0], qkv[1], qkv[2]
    attn = jnp.einsum('bhnd,bhmd->bhnm', q * mod.scale, k)
    attn = jax.nn.softmax(attn, axis=-1)
    out = jnp.einsum('bhnm,bhmd->bhnd', attn, v)
    out = jnp.transpose(out, (0, 2, 1, 3)).reshape(B_w, N_w, C)
    out = out @ mod.wproj + mod.bproj[0]
    out = out.reshape(-1, ws1, ws0, C)
    out = window_reverse(out, mod.window_size, Hp, Wp)
    if pad_r > 0 or pad_b > 0:
        out = out[:, :H, :W, :]
    return out.reshape(B_, H * W, C)


# ------------------------- main -------------------------

if __name__ == "__main__":
    key = jax.random.PRNGKey(0)
    k_param, k_x = jax.random.split(key)

    dim = 32
    num_heads = 4
    window_size = (4, 4)
    B_, H, W = 2, 8, 8                       # N = H*W = 64 -> 8 windows of 16 tokens

    mod = WindowAttentionPallas(dim, window_size, num_heads, k_param)
    x = jax.random.normal(k_x, (B_, H * W, dim), jnp.float32)

    out = mod(x, H, W)
    out = jax.block_until_ready(out)

    ref = _reference_forward(mod, x, H, W)
    assert out.shape == (B_, H * W, dim)
    # bf16 MXU operands + approx reciprocal vs pure-f32 reference -> loose tol.
    assert jnp.allclose(out, ref, atol=2e-2, rtol=2e-2), "mismatch vs reference"

    print("KERNEL_OK")
</pallas_src>

<mosaic_0001>
module attributes {stable_mosaic.version = 11 : i64} {
  func.func @_window_attn_kernel(%arg0: i32, %arg1: memref<64x32xbf16, #tpu.memory_space<vmem>>, %arg2: memref<4x32x8xbf16, #tpu.memory_space<vmem>>, %arg3: memref<4x32x8xbf16, #tpu.memory_space<vmem>>, %arg4: memref<4x32x8xbf16, #tpu.memory_space<vmem>>, %arg5: memref<4x8x32xbf16, #tpu.memory_space<vmem>>, %arg6: memref<4x1x8xf32, #tpu.memory_space<vmem>>, %arg7: memref<4x1x8xf32, #tpu.memory_space<vmem>>, %arg8: memref<4x1x8xf32, #tpu.memory_space<vmem>>, %arg9: memref<1x32xf32, #tpu.memory_space<vmem>>, %arg10: memref<64x32xf32, #tpu.memory_space<vmem>>) attributes {dimension_semantics = [#tpu.dimension_semantics<parallel>], iteration_bounds = array<i64: 2>, scalar_prefetch = 0 : i64, scratch_operands = 0 : i64, tpu.core_type = #tpu.core_type<tc>, window_params = [{transform_indices = @transform_0, window_bounds = array<i64: 64, 32>}, {pipeline_mode = #tpu.pipeline_mode<synchronous>, transform_indices = @transform_1, window_bounds = array<i64: 4, 32, 8>}, {pipeline_mode = #tpu.pipeline_mode<synchronous>, transform_indices = @transform_2, window_bounds = array<i64: 4, 32, 8>}, {pipeline_mode = #tpu.pipeline_mode<synchronous>, transform_indices = @transform_3, window_bounds = array<i64: 4, 32, 8>}, {pipeline_mode = #tpu.pipeline_mode<synchronous>, transform_indices = @transform_4, window_bounds = array<i64: 4, 8, 32>}, {pipeline_mode = #tpu.pipeline_mode<synchronous>, transform_indices = @transform_5, window_bounds = array<i64: 4, 1, 8>}, {pipeline_mode = #tpu.pipeline_mode<synchronous>, transform_indices = @transform_6, window_bounds = array<i64: 4, 1, 8>}, {pipeline_mode = #tpu.pipeline_mode<synchronous>, transform_indices = @transform_7, window_bounds = array<i64: 4, 1, 8>}, {pipeline_mode = #tpu.pipeline_mode<synchronous>, transform_indices = @transform_8, window_bounds = array<i64: 1, 32>}, {transform_indices = @transform_9, window_bounds = array<i64: 64, 32>}]} {
    %c0 = arith.constant 0 : index
    %c0_0 = arith.constant 0 : index
    %0 = vector.load %arg1[%c0, %c0_0] : memref<64x32xbf16, #tpu.memory_space<vmem>>, vector<64x32xbf16>
    %c0_1 = arith.constant 0 : index
    %c0_2 = arith.constant 0 : index
    %1 = vector.load %arg9[%c0_1, %c0_2] : memref<1x32xf32, #tpu.memory_space<vmem>>, vector<1x32xf32>
    %2 = vector.shape_cast %1 : vector<1x32xf32> to vector<1x32xf32>
    %3 = vector.broadcast %2 : vector<1x32xf32> to vector<64x32xf32>
    %c0_3 = arith.constant 0 : index
    %c0_4 = arith.constant 0 : index
    %c0_5 = arith.constant 0 : index
    %4 = vector.load %arg2[%c0_3, %c0_4, %c0_5] : memref<4x32x8xbf16, #tpu.memory_space<vmem>>, vector<1x32x8xbf16>
    %5 = vector.shape_cast %4 : vector<1x32x8xbf16> to vector<32x8xbf16>
    %cst = arith.constant dense<0.000000e+00> : vector<64x8xf32>
    %6 = tpu.matmul %0, %5, %cst {dimension_numbers = #tpu.dot_dimension_numbers<[1], [0], [0], [1], [0, 0, 1, 1], [], []>} : vector<64x32xbf16>, vector<32x8xbf16>, vector<64x8xf32> -> vector<64x8xf32>
    %c0_6 = arith.constant 0 : index
    %c0_7 = arith.constant 0 : index
    %c0_8 = arith.constant 0 : index
    %7 = vector.load %arg6[%c0_6, %c0_7, %c0_8] : memref<4x1x8xf32, #tpu.memory_space<vmem>>, vector<1x1x8xf32>
    %8 = vector.shape_cast %7 : vector<1x1x8xf32> to vector<1x8xf32>
    %9 = vector.broadcast %8 : vector<1x8xf32> to vector<64x8xf32>
    %10 = arith.addf %6, %9 : vector<64x8xf32>
    %c0_9 = arith.constant 0 : index
    %c0_10 = arith.constant 0 : index
    %c0_11 = arith.constant 0 : index
    %11 = vector.load %arg3[%c0_9, %c0_10, %c0_11] : memref<4x32x8xbf16, #tpu.memory_space<vmem>>, vector<1x32x8xbf16>
    %12 = vector.shape_cast %11 : vector<1x32x8xbf16> to vector<32x8xbf16>
    %cst_12 = arith.constant dense<0.000000e+00> : vector<64x8xf32>
    %13 = tpu.matmul %0, %12, %cst_12 {dimension_numbers = #tpu.dot_dimension_numbers<[1], [0], [0], [1], [0, 0, 1, 1], [], []>} : vector<64x32xbf16>, vector<32x8xbf16>, vector<64x8xf32> -> vector<64x8xf32>
    %c0_13 = arith.constant 0 : index
    %c0_14 = arith.constant 0 : index
    %c0_15 = arith.constant 0 : index
    %14 = vector.load %arg7[%c0_13, %c0_14, %c0_15] : memref<4x1x8xf32, #tpu.memory_space<vmem>>, vector<1x1x8xf32>
    %15 = vector.shape_cast %14 : vector<1x1x8xf32> to vector<1x8xf32>
    %16 = vector.broadcast %15 : vector<1x8xf32> to vector<64x8xf32>
    %17 = arith.addf %13, %16 : vector<64x8xf32>
    %c0_16 = arith.constant 0 : index
    %c0_17 = arith.constant 0 : index
    %c0_18 = arith.constant 0 : index
    %18 = vector.load %arg4[%c0_16, %c0_17, %c0_18] : memref<4x32x8xbf16, #tpu.memory_space<vmem>>, vector<1x32x8xbf16>
    %19 = vector.shape_cast %18 : vector<1x32x8xbf16> to vector<32x8xbf16>
    %cst_19 = arith.constant dense<0.000000e+00> : vector<64x8xf32>
    %20 = tpu.matmul %0, %19, %cst_19 {dimension_numbers = #tpu.dot_dimension_numbers<[1], [0], [0], [1], [0, 0, 1, 1], [], []>} : vector<64x32xbf16>, vector<32x8xbf16>, vector<64x8xf32> -> vector<64x8xf32>
    %c0_20 = arith.constant 0 : index
    %c0_21 = arith.constant 0 : index
    %c0_22 = arith.constant 0 : index
    %21 = vector.load %arg8[%c0_20, %c0_21, %c0_22] : memref<4x1x8xf32, #tpu.memory_space<vmem>>, vector<1x1x8xf32>
    %22 = vector.shape_cast %21 : vector<1x1x8xf32> to vector<1x8xf32>
    %23 = vector.broadcast %22 : vector<1x8xf32> to vector<64x8xf32>
    %24 = arith.addf %20, %23 : vector<64x8xf32>
    %25 = vector.shape_cast %10 : vector<64x8xf32> to vector<4x16x8xf32>
    %26 = arith.truncf %25 : vector<4x16x8xf32> to vector<4x16x8xbf16>
    %27 = vector.shape_cast %17 : vector<64x8xf32> to vector<4x16x8xf32>
    %28 = arith.truncf %27 : vector<4x16x8xf32> to vector<4x16x8xbf16>
    %29 = vector.shape_cast %24 : vector<64x8xf32> to vector<4x16x8xf32>
    %30 = arith.truncf %29 : vector<4x16x8xf32> to vector<4x16x8xbf16>
    "tpu.trace_start"() <{level = 10 : i32, message = "bqd,bkd->bqk"}> : () -> ()
    %cst_23 = arith.constant dense<0.000000e+00> : vector<4x16x16xf32>
    %31 = tpu.matmul %26, %28, %cst_23 {dimension_numbers = #tpu.dot_dimension_numbers<[2], [2], [1], [1], [0, 0, 0, 1, 1, 1], [0], [0]>} : vector<4x16x8xbf16>, vector<4x16x8xbf16>, vector<4x16x16xf32> -> vector<4x16x16xf32>
    "tpu.trace_stop"() : () -> ()
    %cst_24 = arith.constant dense<0xFF800000> : vector<4x16xf32>
    %32 = vector.multi_reduction <maximumf>, %31, %cst_24 [2] : vector<4x16x16xf32> to vector<4x16xf32>
    %33 = vector.shape_cast %32 : vector<4x16xf32> to vector<4x16x1xf32>
    %34 = vector.broadcast %33 : vector<4x16x1xf32> to vector<4x16x16xf32>
    %35 = arith.subf %31, %34 : vector<4x16x16xf32>
    %36 = math.exp %35 : vector<4x16x16xf32>
    %cst_25 = arith.constant dense<0.000000e+00> : vector<4x16xf32>
    %37 = vector.multi_reduction <add>, %36, %cst_25 [2] : vector<4x16x16xf32> to vector<4x16xf32>
    %38 = vector.shape_cast %37 : vector<4x16xf32> to vector<4x16x1xf32>
    %39 = tpu.reciprocal %38 {approx = true} : vector<4x16x1xf32> -> vector<4x16x1xf32>
    %40 = vector.broadcast %39 : vector<4x16x1xf32> to vector<4x16x16xf32>
    %41 = arith.mulf %36, %40 : vector<4x16x16xf32>
    %42 = arith.truncf %41 : vector<4x16x16xf32> to vector<4x16x16xbf16>
    "tpu.trace_start"() <{level = 10 : i32, message = "bqk,bkd->bqd"}> : () -> ()
    %cst_26 = arith.constant dense<0.000000e+00> : vector<4x16x8xf32>
    %43 = tpu.matmul %42, %30, %cst_26 {dimension_numbers = #tpu.dot_dimension_numbers<[2], [1], [1], [2], [0, 0, 0, 1, 1, 2], [0], [0]>} : vector<4x16x16xbf16>, vector<4x16x8xbf16>, vector<4x16x8xf32> -> vector<4x16x8xf32>
    "tpu.trace_stop"() : () -> ()
    %44 = vector.shape_cast %43 : vector<4x16x8xf32> to vector<64x8xf32>
    %45 = arith.truncf %44 : vector<64x8xf32> to vector<64x8xbf16>
    %c0_27 = arith.constant 0 : index
    %c0_28 = arith.constant 0 : index
    %c0_29 = arith.constant 0 : index
    %46 = vector.load %arg5[%c0_27, %c0_28, %c0_29] : memref<4x8x32xbf16, #tpu.memory_space<vmem>>, vector<1x8x32xbf16>
    %47 = vector.shape_cast %46 : vector<1x8x32xbf16> to vector<8x32xbf16>
    %cst_30 = arith.constant dense<0.000000e+00> : vector<64x32xf32>
    %48 = tpu.matmul %45, %47, %cst_30 {dimension_numbers = #tpu.dot_dimension_numbers<[1], [0], [0], [1], [0, 0, 1, 1], [], []>} : vector<64x8xbf16>, vector<8x32xbf16>, vector<64x32xf32> -> vector<64x32xf32>
    %49 = arith.addf %3, %48 : vector<64x32xf32>
    %c1 = arith.constant 1 : index
    %c0_31 = arith.constant 0 : index
    %c0_32 = arith.constant 0 : index
    %50 = vector.load %arg2[%c1, %c0_31, %c0_32] : memref<4x32x8xbf16, #tpu.memory_space<vmem>>, vector<1x32x8xbf16>
    %51 = vector.shape_cast %50 : vector<1x32x8xbf16> to vector<32x8xbf16>
    %cst_33 = arith.constant dense<0.000000e+00> : vector<64x8xf32>
    %52 = tpu.matmul %0, %51, %cst_33 {dimension_numbers = #tpu.dot_dimension_numbers<[1], [0], [0], [1], [0, 0, 1, 1], [], []>} : vector<64x32xbf16>, vector<32x8xbf16>, vector<64x8xf32> -> vector<64x8xf32>
    %c1_34 = arith.constant 1 : index
    %c0_35 = arith.constant 0 : index
    %c0_36 = arith.constant 0 : index
    %53 = vector.load %arg6[%c1_34, %c0_35, %c0_36] : memref<4x1x8xf32, #tpu.memory_space<vmem>>, vector<1x1x8xf32>
    %54 = vector.shape_cast %53 : vector<1x1x8xf32> to vector<1x8xf32>
    %55 = vector.broadcast %54 : vector<1x8xf32> to vector<64x8xf32>
    %56 = arith.addf %52, %55 : vector<64x8xf32>
    %c1_37 = arith.constant 1 : index
    %c0_38 = arith.constant 0 : index
    %c0_39 = arith.constant 0 : index
    %57 = vector.load %arg3[%c1_37, %c0_38, %c0_39] : memref<4x32x8xbf16, #tpu.memory_space<vmem>>, vector<1x32x8xbf16>
    %58 = vector.shape_cast %57 : vector<1x32x8xbf16> to vector<32x8xbf16>
    %cst_40 = arith.constant dense<0.000000e+00> : vector<64x8xf32>
    %59 = tpu.matmul %0, %58, %cst_40 {dimension_numbers = #tpu.dot_dimension_numbers<[1], [0], [0], [1], [0, 0, 1, 1], [], []>} : vector<64x32xbf16>, vector<32x8xbf16>, vector<64x8xf32> -> vector<64x8xf32>
    %c1_41 = arith.constant 1 : index
    %c0_42 = arith.constant 0 : index
    %c0_43 = arith.constant 0 : index
    %60 = vector.load %arg7[%c1_41, %c0_42, %c0_43] : memref<4x1x8xf32, #tpu.memory_space<vmem>>, vector<1x1x8xf32>
    %61 = vector.shape_cast %60 : vector<1x1x8xf32> to vector<1x8xf32>
    %62 = vector.broadcast %61 : vector<1x8xf32> to vector<64x8xf32>
    %63 = arith.addf %59, %62 : vector<64x8xf32>
    %c1_44 = arith.constant 1 : index
    %c0_45 = arith.constant 0 : index
    %c0_46 = arith.constant 0 : index
    %64 = vector.load %arg4[%c1_44, %c0_45, %c0_46] : memref<4x32x8xbf16, #tpu.memory_space<vmem>>, vector<1x32x8xbf16>
    %65 = vector.shape_cast %64 : vector<1x32x8xbf16> to vector<32x8xbf16>
    %cst_47 = arith.constant dense<0.000000e+00> : vector<64x8xf32>
    %66 = tpu.matmul %0, %65, %cst_47 {dimension_numbers = #tpu.dot_dimension_numbers<[1], [0], [0], [1], [0, 0, 1, 1], [], []>} : vector<64x32xbf16>, vector<32x8xbf16>, vector<64x8xf32> -> vector<64x8xf32>
    %c1_48 = arith.constant 1 : index
    %c0_49 = arith.constant 0 : index
    %c0_50 = arith.constant 0 : index
    %67 = vector.load %arg8[%c1_48, %c0_49, %c0_50] : memref<4x1x8xf32, #tpu.memory_space<vmem>>, vector<1x1x8xf32>
    %68 = vector.shape_cast %67 : vector<1x1x8xf32> to vector<1x8xf32>
    %69 = vector.broadcast %68 : vector<1x8xf32> to vector<64x8xf32>
    %70 = arith.addf %66, %69 : vector<64x8xf32>
    %71 = vector.shape_cast %56 : vector<64x8xf32> to vector<4x16x8xf32>
    %72 = arith.truncf %71 : vector<4x16x8xf32> to vector<4x16x8xbf16>
    %73 = vector.shape_cast %63 : vector<64x8xf32> to vector<4x16x8xf32>
    %74 = arith.truncf %73 : vector<4x16x8xf32> to vector<4x16x8xbf16>
    %75 = vector.shape_cast %70 : vector<64x8xf32> to vector<4x16x8xf32>
    %76 = arith.truncf %75 : vector<4x16x8xf32> to vector<4x16x8xbf16>
    "tpu.trace_start"() <{level = 10 : i32, message = "bqd,bkd->bqk"}> : () -> ()
    %cst_51 = arith.constant dense<0.000000e+00> : vector<4x16x16xf32>
    %77 = tpu.matmul %72, %74, %cst_51 {dimension_numbers = #tpu.dot_dimension_numbers<[2], [2], [1], [1], [0, 0, 0, 1, 1, 1], [0], [0]>} : vector<4x16x8xbf16>, vector<4x16x8xbf16>, vector<4x16x16xf32> -> vector<4x16x16xf32>
    "tpu.trace_stop"() : () -> ()
    %cst_52 = arith.constant dense<0xFF800000> : vector<4x16xf32>
    %78 = vector.multi_reduction <maximumf>, %77, %cst_52 [2] : vector<4x16x16xf32> to vector<4x16xf32>
    %79 = vector.shape_cast %78 : vector<4x16xf32> to vector<4x16x1xf32>
    %80 = vector.broadcast %79 : vector<4x16x1xf32> to vector<4x16x16xf32>
    %81 = arith.subf %77, %80 : vector<4x16x16xf32>
    %82 = math.exp %81 : vector<4x16x16xf32>
    %cst_53 = arith.constant dense<0.000000e+00> : vector<4x16xf32>
    %83 = vector.multi_reduction <add>, %82, %cst_53 [2] : vector<4x16x16xf32> to vector<4x16xf32>
    %84 = vector.shape_cast %83 : vector<4x16xf32> to vector<4x16x1xf32>
    %85 = tpu.reciprocal %84 {approx = true} : vector<4x16x1xf32> -> vector<4x16x1xf32>
    %86 = vector.broadcast %85 : vector<4x16x1xf32> to vector<4x16x16xf32>
    %87 = arith.mulf %82, %86 : vector<4x16x16xf32>
    %88 = arith.truncf %87 : vector<4x16x16xf32> to vector<4x16x16xbf16>
    "tpu.trace_start"() <{level = 10 : i32, message = "bqk,bkd->bqd"}> : () -> ()
    %cst_54 = arith.constant dense<0.000000e+00> : vector<4x16x8xf32>
    %89 = tpu.matmul %88, %76, %cst_54 {dimension_numbers = #tpu.dot_dimension_numbers<[2], [1], [1], [2], [0, 0, 0, 1, 1, 2], [0], [0]>} : vector<4x16x16xbf16>, vector<4x16x8xbf16>, vector<4x16x8xf32> -> vector<4x16x8xf32>
    "tpu.trace_stop"() : () -> ()
    %90 = vector.shape_cast %89 : vector<4x16x8xf32> to vector<64x8xf32>
    %91 = arith.truncf %90 : vector<64x8xf32> to vector<64x8xbf16>
    %c1_55 = arith.constant 1 : index
    %c0_56 = arith.constant 0 : index
    %c0_57 = arith.constant 0 : index
    %92 = vector.load %arg5[%c1_55, %c0_56, %c0_57] : memref<4x8x32xbf16, #tpu.memory_space<vmem>>, vector<1x8x32xbf16>
    %93 = vector.shape_cast %92 : vector<1x8x32xbf16> to vector<8x32xbf16>
    %cst_58 = arith.constant dense<0.000000e+00> : vector<64x32xf32>
    %94 = tpu.matmul %91, %93, %cst_58 {dimension_numbers = #tpu.dot_dimension_numbers<[1], [0], [0], [1], [0, 0, 1, 1], [], []>} : vector<64x8xbf16>, vector<8x32xbf16>, vector<64x32xf32> -> vector<64x32xf32>
    %95 = arith.addf %49, %94 : vector<64x32xf32>
    %c2 = arith.constant 2 : index
    %c0_59 = arith.constant 0 : index
    %c0_60 = arith.constant 0 : index
    %96 = vector.load %arg2[%c2, %c0_59, %c0_60] : memref<4x32x8xbf16, #tpu.memory_space<vmem>>, vector<1x32x8xbf16>
    %97 = vector.shape_cast %96 : vector<1x32x8xbf16> to vector<32x8xbf16>
    %cst_61 = arith.constant dense<0.000000e+00> : vector<64x8xf32>
    %98 = tpu.matmul %0, %97, %cst_61 {dimension_numbers = #tpu.dot_dimension_numbers<[1], [0], [0], [1], [0, 0, 1, 1], [], []>} : vector<64x32xbf16>, vector<32x8xbf16>, vector<64x8xf32> -> vector<64x8xf32>
    %c2_62 = arith.constant 2 : index
    %c0_63 = arith.constant 0 : index
    %c0_64 = arith.constant 0 : index
    %99 = vector.load %arg6[%c2_62, %c0_63, %c0_64] : memref<4x1x8xf32, #tpu.memory_space<vmem>>, vector<1x1x8xf32>
    %100 = vector.shape_cast %99 : vector<1x1x8xf32> to vector<1x8xf32>
    %101 = vector.broadcast %100 : vector<1x8xf32> to vector<64x8xf32>
    %102 = arith.addf %98, %101 : vector<64x8xf32>
    %c2_65 = arith.constant 2 : index
    %c0_66 = arith.constant 0 : index
    %c0_67 = arith.constant 0 : index
    %103 = vector.load %arg3[%c2_65, %c0_66, %c0_67] : memref<4x32x8xbf16, #tpu.memory_space<vmem>>, vector<1x32x8xbf16>
    %104 = vector.shape_cast %103 : vector<1x32x8xbf16> to vector<32x8xbf16>
    %cst_68 = arith.constant dense<0.000000e+00> : vector<64x8xf32>
    %105 = tpu.matmul %0, %104, %cst_68 {dimension_numbers = #tpu.dot_dimension_numbers<[1], [0], [0], [1], [0, 0, 1, 1], [], []>} : vector<64x32xbf16>, vector<32x8xbf16>, vector<64x8xf32> -> vector<64x8xf32>
    %c2_69 = arith.constant 2 : index
    %c0_70 = arith.constant 0 : index
    %c0_71 = arith.constant 0 : index
    %106 = vector.load %arg7[%c2_69, %c0_70, %c0_71] : memref<4x1x8xf32, #tpu.memory_space<vmem>>, vector<1x1x8xf32>
    %107 = vector.shape_cast %106 : vector<1x1x8xf32> to vector<1x8xf32>
    %108 = vector.broadcast %107 : vector<1x8xf32> to vector<64x8xf32>
    %109 = arith.addf %105, %108 : vector<64x8xf32>
    %c2_72 = arith.constant 2 : index
    %c0_73 = arith.constant 0 : index
    %c0_74 = arith.constant 0 : index
    %110 = vector.load %arg4[%c2_72, %c0_73, %c0_74] : memref<4x32x8xbf16, #tpu.memory_space<vmem>>, vector<1x32x8xbf16>
    %111 = vector.shape_cast %110 : vector<1x32x8xbf16> to vector<32x8xbf16>
    %cst_75 = arith.constant dense<0.000000e+00> : vector<64x8xf32>
    %112 = tpu.matmul %0, %111, %cst_75 {dimension_numbers = #tpu.dot_dimension_numbers<[1], [0], [0], [1], [0, 0, 1, 1], [], []>} : vector<64x32xbf16>, vector<32x8xbf16>, vector<64x8xf32> -> vector<64x8xf32>
    %c2_76 = arith.constant 2 : index
    %c0_77 = arith.constant 0 : index
    %c0_78 = arith.constant 0 : index
    %113 = vector.load %arg8[%c2_76, %c0_77, %c0_78] : memref<4x1x8xf32, #tpu.memory_space<vmem>>, vector<1x1x8xf32>
    %114 = vector.shape_cast %113 : vector<1x1x8xf32> to vector<1x8xf32>
    %115 = vector.broadcast %114 : vector<1x8xf32> to vector<64x8xf32>
    %116 = arith.addf %112, %115 : vector<64x8xf32>
    %117 = vector.shape_cast %102 : vector<64x8xf32> to vector<4x16x8xf32>
    %118 = arith.truncf %117 : vector<4x16x8xf32> to vector<4x16x8xbf16>
    %119 = vector.shape_cast %109 : vector<64x8xf32> to vector<4x16x8xf32>
    %120 = arith.truncf %119 : vector<4x16x8xf32> to vector<4x16x8xbf16>
    %121 = vector.shape_cast %116 : vector<64x8xf32> to vector<4x16x8xf32>
    %122 = arith.truncf %121 : vector<4x16x8xf32> to vector<4x16x8xbf16>
    "tpu.trace_start"() <{level = 10 : i32, message = "bqd,bkd->bqk"}> : () -> ()
    %cst_79 = arith.constant dense<0.000000e+00> : vector<4x16x16xf32>
    %123 = tpu.matmul %118, %120, %cst_79 {dimension_numbers = #tpu.dot_dimension_numbers<[2], [2], [1], [1], [0, 0, 0, 1, 1, 1], [0], [0]>} : vector<4x16x8xbf16>, vector<4x16x8xbf16>, vector<4x16x16xf32> -> vector<4x16x16xf32>
    "tpu.trace_stop"() : () -> ()
    %cst_80 = arith.constant dense<0xFF800000> : vector<4x16xf32>
    %124 = vector.multi_reduction <maximumf>, %123, %cst_80 [2] : vector<4x16x16xf32> to vector<4x16xf32>
    %125 = vector.shape_cast %124 : vector<4x16xf32> to vector<4x16x1xf32>
    %126 = vector.broadcast %125 : vector<4x16x1xf32> to vector<4x16x16xf32>
    %127 = arith.subf %123, %126 : vector<4x16x16xf32>
    %128 = math.exp %127 : vector<4x16x16xf32>
    %cst_81 = arith.constant dense<0.000000e+00> : vector<4x16xf32>
    %129 = vector.multi_reduction <add>, %128, %cst_81 [2] : vector<4x16x16xf32> to vector<4x16xf32>
    %130 = vector.shape_cast %129 : vector<4x16xf32> to vector<4x16x1xf32>
    %131 = tpu.reciprocal %130 {approx = true} : vector<4x16x1xf32> -> vector<4x16x1xf32>
    %132 = vector.broadcast %131 : vector<4x16x1xf32> to vector<4x16x16xf32>
    %133 = arith.mulf %128, %132 : vector<4x16x16xf32>
    %134 = arith.truncf %133 : vector<4x16x16xf32> to vector<4x16x16xbf16>
    "tpu.trace_start"() <{level = 10 : i32, message = "bqk,bkd->bqd"}> : () -> ()
    %cst_82 = arith.constant dense<0.000000e+00> : vector<4x16x8xf32>
    %135 = tpu.matmul %134, %122, %cst_82 {dimension_numbers = #tpu.dot_dimension_numbers<[2], [1], [1], [2], [0, 0, 0, 1, 1, 2], [0], [0]>} : vector<4x16x16xbf16>, vector<4x16x8xbf16>, vector<4x16x8xf32> -> vector<4x16x8xf32>
    "tpu.trace_stop"() : () -> ()
    %136 = vector.shape_cast %135 : vector<4x16x8xf32> to vector<64x8xf32>
    %137 = arith.truncf %136 : vector<64x8xf32> to vector<64x8xbf16>
    %c2_83 = arith.constant 2 : index
    %c0_84 = arith.constant 0 : index
    %c0_85 = arith.constant 0 : index
    %138 = vector.load %arg5[%c2_83, %c0_84, %c0_85] : memref<4x8x32xbf16, #tpu.memory_space<vmem>>, vector<1x8x32xbf16>
    %139 = vector.shape_cast %138 : vector<1x8x32xbf16> to vector<8x32xbf16>
    %cst_86 = arith.constant dense<0.000000e+00> : vector<64x32xf32>
    %140 = tpu.matmul %137, %139, %cst_86 {dimension_numbers = #tpu.dot_dimension_numbers<[1], [0], [0], [1], [0, 0, 1, 1], [], []>} : vector<64x8xbf16>, vector<8x32xbf16>, vector<64x32xf32> -> vector<64x32xf32>
    %141 = arith.addf %95, %140 : vector<64x32xf32>
    %c3 = arith.constant 3 : index
    %c0_87 = arith.constant 0 : index
    %c0_88 = arith.constant 0 : index
    %142 = vector.load %arg2[%c3, %c0_87, %c0_88] : memref<4x32x8xbf16, #tpu.memory_space<vmem>>, vector<1x32x8xbf16>
    %143 = vector.shape_cast %142 : vector<1x32x8xbf16> to vector<32x8xbf16>
    %cst_89 = arith.constant dense<0.000000e+00> : vector<64x8xf32>
    %144 = tpu.matmul %0, %143, %cst_89 {dimension_numbers = #tpu.dot_dimension_numbers<[1], [0], [0], [1], [0, 0, 1, 1], [], []>} : vector<64x32xbf16>, vector<32x8xbf16>, vector<64x8xf32> -> vector<64x8xf32>
    %c3_90 = arith.constant 3 : index
    %c0_91 = arith.constant 0 : index
    %c0_92 = arith.constant 0 : index
    %145 = vector.load %arg6[%c3_90, %c0_91, %c0_92] : memref<4x1x8xf32, #tpu.memory_space<vmem>>, vector<1x1x8xf32>
    %146 = vector.shape_cast %145 : vector<1x1x8xf32> to vector<1x8xf32>
    %147 = vector.broadcast %146 : vector<1x8xf32> to vector<64x8xf32>
    %148 = arith.addf %144, %147 : vector<64x8xf32>
    %c3_93 = arith.constant 3 : index
    %c0_94 = arith.constant 0 : index
    %c0_95 = arith.constant 0 : index
    %149 = vector.load %arg3[%c3_93, %c0_94, %c0_95] : memref<4x32x8xbf16, #tpu.memory_space<vmem>>, vector<1x32x8xbf16>
    %150 = vector.shape_cast %149 : vector<1x32x8xbf16> to vector<32x8xbf16>
    %cst_96 = arith.constant dense<0.000000e+00> : vector<64x8xf32>
    %151 = tpu.matmul %0, %150, %cst_96 {dimension_numbers = #tpu.dot_dimension_numbers<[1], [0], [0], [1], [0, 0, 1, 1], [], []>} : vector<64x32xbf16>, vector<32x8xbf16>, vector<64x8xf32> -> vector<64x8xf32>
    %c3_97 = arith.constant 3 : index
    %c0_98 = arith.constant 0 : index
    %c0_99 = arith.constant 0 : index
    %152 = vector.load %arg7[%c3_97, %c0_98, %c0_99] : memref<4x1x8xf32, #tpu.memory_space<vmem>>, vector<1x1x8xf32>
    %153 = vector.shape_cast %152 : vector<1x1x8xf32> to vector<1x8xf32>
    %154 = vector.broadcast %153 : vector<1x8xf32> to vector<64x8xf32>
    %155 = arith.addf %151, %154 : vector<64x8xf32>
    %c3_100 = arith.constant 3 : index
    %c0_101 = arith.constant 0 : index
    %c0_102 = arith.constant 0 : index
    %156 = vector.load %arg4[%c3_100, %c0_101, %c0_102] : memref<4x32x8xbf16, #tpu.memory_space<vmem>>, vector<1x32x8xbf16>
    %157 = vector.shape_cast %156 : vector<1x32x8xbf16> to vector<32x8xbf16>
    %cst_103 = arith.constant dense<0.000000e+00> : vector<64x8xf32>
    %158 = tpu.matmul %0, %157, %cst_103 {dimension_numbers = #tpu.dot_dimension_numbers<[1], [0], [0], [1], [0, 0, 1, 1], [], []>} : vector<64x32xbf16>, vector<32x8xbf16>, vector<64x8xf32> -> vector<64x8xf32>
    %c3_104 = arith.constant 3 : index
    %c0_105 = arith.constant 0 : index
    %c0_106 = arith.constant 0 : index
    %159 = vector.load %arg8[%c3_104, %c0_105, %c0_106] : memref<4x1x8xf32, #tpu.memory_space<vmem>>, vector<1x1x8xf32>
    %160 = vector.shape_cast %159 : vector<1x1x8xf32> to vector<1x8xf32>
    %161 = vector.broadcast %160 : vector<1x8xf32> to vector<64x8xf32>
    %162 = arith.addf %158, %161 : vector<64x8xf32>
    %163 = vector.shape_cast %148 : vector<64x8xf32> to vector<4x16x8xf32>
    %164 = arith.truncf %163 : vector<4x16x8xf32> to vector<4x16x8xbf16>
    %165 = vector.shape_cast %155 : vector<64x8xf32> to vector<4x16x8xf32>
    %166 = arith.truncf %165 : vector<4x16x8xf32> to vector<4x16x8xbf16>
    %167 = vector.shape_cast %162 : vector<64x8xf32> to vector<4x16x8xf32>
    %168 = arith.truncf %167 : vector<4x16x8xf32> to vector<4x16x8xbf16>
    "tpu.trace_start"() <{level = 10 : i32, message = "bqd,bkd->bqk"}> : () -> ()
    %cst_107 = arith.constant dense<0.000000e+00> : vector<4x16x16xf32>
    %169 = tpu.matmul %164, %166, %cst_107 {dimension_numbers = #tpu.dot_dimension_numbers<[2], [2], [1], [1], [0, 0, 0, 1, 1, 1], [0], [0]>} : vector<4x16x8xbf16>, vector<4x16x8xbf16>, vector<4x16x16xf32> -> vector<4x16x16xf32>
    "tpu.trace_stop"() : () -> ()
    %cst_108 = arith.constant dense<0xFF800000> : vector<4x16xf32>
    %170 = vector.multi_reduction <maximumf>, %169, %cst_108 [2] : vector<4x16x16xf32> to vector<4x16xf32>
    %171 = vector.shape_cast %170 : vector<4x16xf32> to vector<4x16x1xf32>
    %172 = vector.broadcast %171 : vector<4x16x1xf32> to vector<4x16x16xf32>
    %173 = arith.subf %169, %172 : vector<4x16x16xf32>
    %174 = math.exp %173 : vector<4x16x16xf32>
    %cst_109 = arith.constant dense<0.000000e+00> : vector<4x16xf32>
    %175 = vector.multi_reduction <add>, %174, %cst_109 [2] : vector<4x16x16xf32> to vector<4x16xf32>
    %176 = vector.shape_cast %175 : vector<4x16xf32> to vector<4x16x1xf32>
    %177 = tpu.reciprocal %176 {approx = true} : vector<4x16x1xf32> -> vector<4x16x1xf32>
    %178 = vector.broadcast %177 : vector<4x16x1xf32> to vector<4x16x16xf32>
    %179 = arith.mulf %174, %178 : vector<4x16x16xf32>
    %180 = arith.truncf %179 : vector<4x16x16xf32> to vector<4x16x16xbf16>
    "tpu.trace_start"() <{level = 10 : i32, message = "bqk,bkd->bqd"}> : () -> ()
    %cst_110 = arith.constant dense<0.000000e+00> : vector<4x16x8xf32>
    %181 = tpu.matmul %180, %168, %cst_110 {dimension_numbers = #tpu.dot_dimension_numbers<[2], [1], [1], [2], [0, 0, 0, 1, 1, 2], [0], [0]>} : vector<4x16x16xbf16>, vector<4x16x8xbf16>, vector<4x16x8xf32> -> vector<4x16x8xf32>
    "tpu.trace_stop"() : () -> ()
    %182 = vector.shape_cast %181 : vector<4x16x8xf32> to vector<64x8xf32>
    %183 = arith.truncf %182 : vector<64x8xf32> to vector<64x8xbf16>
    %c3_111 = arith.constant 3 : index
    %c0_112 = arith.constant 0 : index
    %c0_113 = arith.constant 0 : index
    %184 = vector.load %arg5[%c3_111, %c0_112, %c0_113] : memref<4x8x32xbf16, #tpu.memory_space<vmem>>, vector<1x8x32xbf16>
    %185 = vector.shape_cast %184 : vector<1x8x32xbf16> to vector<8x32xbf16>
    %cst_114 = arith.constant dense<0.000000e+00> : vector<64x32xf32>
    %186 = tpu.matmul %183, %185, %cst_114 {dimension_numbers = #tpu.dot_dimension_numbers<[1], [0], [0], [1], [0, 0, 1, 1], [], []>} : vector<64x8xbf16>, vector<8x32xbf16>, vector<64x32xf32> -> vector<64x32xf32>
    %187 = arith.addf %141, %186 : vector<64x32xf32>
    %c0_115 = arith.constant 0 : index
    %c0_116 = arith.constant 0 : index
    %188 = vector.load %arg10[%c0_115, %c0_116] : memref<64x32xf32, #tpu.memory_space<vmem>>, vector<64x32xf32>
    tpu.vector_store %arg10[%c0_115, %c0_116], %187 {strides = array<i32>} : memref<64x32xf32, #tpu.memory_space<vmem>>, vector<64x32xf32>,
    return
  }
  func.func @transform_0(%arg0: i32) -> (i32, i32) {
    %c0_i32 = arith.constant 0 : i32
    %c0_i32_0 = arith.constant 0 : i32
    return %arg0, %c0_i32 : i32, i32
  }
  func.func @transform_1(%arg0: i32) -> (i32, i32, i32) {
    %c0_i32 = arith.constant 0 : i32
    %c0_i32_0 = arith.constant 0 : i32
    %c0_i32_1 = arith.constant 0 : i32
    %c0_i32_2 = arith.constant 0 : i32
    return %c0_i32, %c0_i32_0, %c0_i32_1 : i32, i32, i32
  }
  func.func @transform_2(%arg0: i32) -> (i32, i32, i32) {
    %c0_i32 = arith.constant 0 : i32
    %c0_i32_0 = arith.constant 0 : i32
    %c0_i32_1 = arith.constant 0 : i32
    %c0_i32_2 = arith.constant 0 : i32
    return %c0_i32, %c0_i32_0, %c0_i32_1 : i32, i32, i32
  }
  func.func @transform_3(%arg0: i32) -> (i32, i32, i32) {
    %c0_i32 = arith.constant 0 : i32
    %c0_i32_0 = arith.constant 0 : i32
    %c0_i32_1 = arith.constant 0 : i32
    %c0_i32_2 = arith.constant 0 : i32
    return %c0_i32, %c0_i32_0, %c0_i32_1 : i32, i32, i32
  }
  func.func @transform_4(%arg0: i32) -> (i32, i32, i32) {
    %c0_i32 = arith.constant 0 : i32
    %c0_i32_0 = arith.constant 0 : i32
    %c0_i32_1 = arith.constant 0 : i32
    %c0_i32_2 = arith.constant 0 : i32
    return %c0_i32, %c0_i32_0, %c0_i32_1 : i32, i32, i32
  }
  func.func @transform_5(%arg0: i32) -> (i32, i32, i32) {
    %c0_i32 = arith.constant 0 : i32
    %c0_i32_0 = arith.constant 0 : i32
    %c0_i32_1 = arith.constant 0 : i32
    %c0_i32_2 = arith.constant 0 : i32
    return %c0_i32, %c0_i32_0, %c0_i32_1 : i32, i32, i32
  }
  func.func @transform_6(%arg0: i32) -> (i32, i32, i32) {
    %c0_i32 = arith.constant 0 : i32
    %c0_i32_0 = arith.constant 0 : i32
    %c0_i32_1 = arith.constant 0 : i32
    %c0_i32_2 = arith.constant 0 : i32
    return %c0_i32, %c0_i32_0, %c0_i32_1 : i32, i32, i32
  }
  func.func @transform_7(%arg0: i32) -> (i32, i32, i32) {
    %c0_i32 = arith.constant 0 : i32
    %c0_i32_0 = arith.constant 0 : i32
    %c0_i32_1 = arith.constant 0 : i32
    %c0_i32_2 = arith.constant 0 : i32
    return %c0_i32, %c0_i32_0, %c0_i32_1 : i32, i32, i32
  }
  func.func @transform_8(%arg0: i32) -> (i32, i32) {
    %c0_i32 = arith.constant 0 : i32
    %c0_i32_0 = arith.constant 0 : i32
    %c0_i32_1 = arith.constant 0 : i32
    return %c0_i32, %c0_i32_0 : i32, i32
  }
  func.func @transform_9(%arg0: i32) -> (i32, i32) {
    %c0_i32 = arith.constant 0 : i32
    %c0_i32_0 = arith.constant 0 : i32
    return %arg0, %c0_i32 : i32, i32
  }
}

</mosaic_0001>

<bundles_post_ra>
// kernel: tpu_custom_call.1
= control target key start
LH: loop header
LB: loop body
LE: loop exit
PB: predicated region body
PF: predicated region fallthrough
CT: control target
= control target key end

     0   :  { %s3207_s30 = smov 0   ;;  %s3802_s0 = inlined_call_operand.vmem [shape: bf16[128,32], index: 0, kind: input, shape index: {}]   ;;  %s3803_s1 = inlined_call_operand.vmem [shape: bf16[4,32,8], index: 1, kind: input, shape index: {}]   ;;  %s3804_s2 = inlined_call_operand.vmem [shape: bf16[4,32,8], index: 2, kind: input, shape index: {}]   ;;  %s3805_s3 = inlined_call_operand.vmem [shape: bf16[4,32,8], index: 3, kind: input, shape index: {}]   ;;  %s3806_s4 = inlined_call_operand.vmem [shape: bf16[4,8,32], index: 4, kind: input, shape index: {}]   ;;  %s3807_s5 = inlined_call_operand.vmem [shape: f32[4,1,8], index: 5, kind: input, shape index: {}]   ;;  %s3808_s6 = inlined_call_operand.vmem [shape: f32[4,1,8], index: 6, kind: input, shape index: {}]   ;;  %s3809_s7 = inlined_call_operand.vmem [shape: f32[4,1,8], index: 7, kind: input, shape index: {}]   ;;  %s3810_s8 = inlined_call_operand.vmem [shape: f32[1,32], index: 8, kind: input, shape index: {}]   ;;  %s3811_s9 = inlined_call_operand.vmem [shape: f32[128,32], index: 9, kind: output, shape index: {}]  }
   0x1 LB: > { %s2694_s10 = sadd.s32 4294967295, %s3155_s30   ;;  %p2698_p0 = scmp.ge.s32.totalorder %s3155_s30, 1  ;;  %s3155_s30 = sphi %s3207_s30, %s19_s30  }
   0x2   : > { %p288_p1 = scmp.lt.s32.totalorder %s3155_s30, 3 }
   0x4   : > { %p289_p2 = pnand %p2698_p0, %p288_p1 }
   0x5   : > { %s2699_s13 = sshll.u32 (!%p289_p2), %s2694_s10, 3 }
   0x6   : > { %292 = sbr.rel (%p289_p2) target bundleno = 2726 (0xaa6), region = 56  ;;  %p325_p3 = scmp.lt.s32.totalorder (!%p289_p2), %s2699_s13, 15 }
   0xb   : > { %v2966_v0 = vld [vmem:[%s3803_s1 + $0x8] sm:$0xff]  ;;  %v2965_v1 = vld [vmem:[%s3803_s1] sm:$0xff]  ;;  %s3813_s13 = smov (!%p325_p3, %s2699_s13), 15  ;;  %vm389_vm0 = vcmask 261120   ;;  %vm563_vm1 = vcmask 64512   ;;  %vm674_vm2 = vcmask 130048  }
   0xc   : > { %2989 = vmatpush.bf16.msra.mxu1 %v2966_v0  ;;  %408 = vmatpush.bf16.msra.mxu0 %v2966_v0  ;;  %v2968_v2 = vld [vmem:[%s3804_s2 + $0x8] sm:$0xff]  ;;  %s2700_s18 = sshll.u32 %s3813_s13, 2  ;;  %v2967_v4 = vld [vmem:[%s3804_s2] sm:$0xff]  ;;  %vm900_vm3 = vcmask 1043456   ;;  %s2702_s24 = sshll.u32 %s3813_s13, 3 }
   0xd   : > { %2990 = vmatpush.bf16.msra.mxu2 %v2966_v0  ;;  %2991 = vmatpush.bf16.msra.mxu3 %v2966_v0  ;;  %s3230_s21 = scalar_lea.vmem %s3802_s0, %s2700_s18  ;;  %v3266_v12 = vld [vmem:[%s3808_s6] ss:$0 sm:$0xff]  ;;  %s3762_s27 = scalar_lea.vmem %s3811_s9, %s2702_s24 }
   0xe   : > { %v3233_v3 = vld [vmem:[%s3230_s21 + $0x8] sm:$0xff]  ;;  %v3239_v5 = vld [vmem:[%s3230_s21] sm:$0xff]  ;;  %v3246_v6 = vld [vmem:[%s3230_s21 + $0x10] sm:$0xff] }
   0xf   : > { %v3253_v7 = vld [vmem:[%s3230_s21 + $0x18] sm:$0xff]  ;;  %v3272_v16 = vld [vmem:[%s3807_s5] ss:$0 sm:$0xff] }
  0x10   : > { %2992 = vmatpush.bf16.msra.mxu1 %v2965_v1  ;;  %409 = vmatpush.bf16.msra.mxu0 %v2965_v1 }
  0x11   : > { %2993 = vmatpush.bf16.msra.mxu2 %v2965_v1  ;;  %2994 = vmatpush.bf16.msra.mxu3 %v2965_v1 }
  0x13   : > { %2728 = vmatmul.msk.bf16.vlgmr.msra.gmra.mxu1 %vm389_vm0, %v3233_v3  ;;  %2727 = vmatmul.msk.bf16.vlgmr.msra.gmra.mxu0 %vm389_vm0, %v3239_v5 }
  0x14   : > { %457 = vmatpush.bf16.msrb.mxu1 %v2968_v2  ;;  %2729 = vmatmul.msk.bf16.vlgmr.msra.gmra.mxu2 %vm389_vm0, %v3246_v6 }
  0x15   : > { %2730 = vmatmul.msk.bf16.vlgmr.msra.gmra.mxu3 %vm389_vm0, %v3253_v7 }
  0x18   : > { %458 = vmatpush.bf16.msrb.mxu1 %v2967_v4 }
  0x23   : > { %2739 = vmatmul.msk.bf16.vlgmr.msrb.gmra.mxu1 %vm389_vm0, %v3239_v5 }
  0x33   : > { %2740 = vmatmul.msk.bf16.gmra.mxu1 %vm389_vm0, %v3233_v3 }
  0x43   : > { %2741 = vmatmul.msk.bf16.gmra.mxu1 %vm389_vm0, %v3246_v6 }
  0x53   : > { %2742 = vmatmul.msk.bf16.gmra.mxu1 %vm389_vm0, %v3253_v7 }
  0x90   : > { %v416_v8 = vpop.f32.mrf.mxu1  ;;  %v411_v10 = vpop.f32.mrf.mxu0 }
  0x91   : > { %v412_v19 = vadd.f32 %v3272_v16, %v411_v10  ;;  %v417_v38 = vadd.f32 %v3272_v16, %v416_v8 }
  0x93   : > { %v529_v24 = vpack.c.bf16 %v412_v19, %v412_v19  ;;  %v531_v45 = vpack.c.bf16 %v417_v38, %v417_v38 }
  0x95   : > { %v555_v29 = vunpack.c.l.b16 %v529_v24  ;;  %v586_v48 = vunpack.c.l.b16 %v531_v45 }
  0x97   : > { %v421_v41 = vpop.f32.mrf.mxu2 }
  0x98   : > { %v418_v9 = vpop.f32.mrf.mxu1  ;;  %v413_v14 = vpop.f32.mrf.mxu0  ;;  %v422_v55 = vadd.f32 %v3272_v16, %v421_v41 }
  0x99   : > { %v414_v20 = vadd.f32 %v3272_v16, %v413_v14  ;;  %v419_v36 = vadd.f32 %v3272_v16, %v418_v9  ;;  %v426_v58 = vpop.f32.mrf.mxu3 }
  0x9a   : > { %v533_v61 = vpack.c.bf16 %v422_v55, %v422_v55  ;;  %v427_v14 = vadd.f32 %v3272_v16, %v426_v58 }
  0x9b   : > { %v530_v25 = vpack.c.bf16 %v414_v20, %v414_v20  ;;  %v532_v42 = vpack.c.bf16 %v419_v36, %v419_v36 }
  0x9c   : > { %v616_v2 = vunpack.c.l.b16 %v533_v61  ;;  %v535_v20 = vpack.c.bf16 %v427_v14, %v427_v14 }
  0x9d   : > { %v556_v30 = vunpack.c.l.b16 %v530_v25  ;;  %v587_v47 = vunpack.c.l.b16 %v532_v42 }
  0x9e   : > { %v646_v24 = vunpack.c.l.b16 %v535_v20 }
  0x9f   : > { %v557_v32 = vpack.c.b16 %v556_v30, %v555_v29  ;;  %v588_v50 = vpack.c.b16 %v587_v47, %v586_v48  ;;  %v423_v51 = vpop.f32.mrf.mxu2 }
  0xa0   : > { %v460_v11 = vpop.f32.mrf.mxu1  ;;  %v424_v56 = vadd.f32 %v3272_v16, %v423_v51 }
  0xa1   : > { %v461_v13 = vadd.f32 %v3266_v12, %v460_v11  ;;  %v428_v9 = vpop.f32.mrf.mxu3 }
  0xa2   : > { %v534_v62 = vpack.c.bf16 %v424_v56, %v424_v56 }
  0xa3   : > { %v537_v17 = vpack.c.bf16 %v461_v13, %v461_v13 }
  0xa4   : > { %v617_v4 = vunpack.c.l.b16 %v534_v62 }
  0xa5   : > { %v560_v22 = vunpack.c.l.b16 %v537_v17  ;;  %v429_v17 = vadd.f32 %v3272_v16, %v428_v9 }
  0xa6   : > { %v618_v10 = vpack.c.b16 %v617_v4, %v616_v2 }
  0xa8   : > { %v462_v15 = vpop.f32.mrf.mxu1 }
  0xa9   : > { %v463_v18 = vadd.f32 %v3266_v12, %v462_v15 }
  0xab   : > { %v538_v21 = vpack.c.bf16 %v463_v18, %v463_v18 }
  0xad   : > { %v561_v23 = vunpack.c.l.b16 %v538_v21 }
  0xaf   : > { %v562_v26 = vpack.c.b16 %v561_v23, %v560_v22  ;;  %v536_v22 = vpack.c.bf16 %v429_v17, %v429_v17 }
  0xb0   : > { %v465_v27 = vpop.f32.mrf.mxu1 }
  0xb1   : > { %v568_v28 = vsel %vm563_vm1, %v562_v26, 0  ;;  %v466_v31 = vadd.f32 %v3266_v12, %v465_v27  ;;  %v647_v25 = vunpack.c.l.b16 %v536_v22 }
  0xb2   : > { %577 = vmatpush.bf16.xpose.msrb.mxu3 %v568_v28 }
  0xb3   : > { %v539_v34 = vpack.c.bf16 %v466_v31, %v466_v31  ;;  %v648_v27 = vpack.c.b16 %v647_v25, %v646_v24 }
  0xb5   : > { %v591_v39 = vunpack.c.l.b16 %v539_v34  ;;  %v2970_v34 = vld [vmem:[%s3805_s3 + $0x8] sm:$0xff] }
  0xb6   : > { %506 = vmatpush.bf16.msrb.mxu2 %v2970_v34 }
  0xb8   : > { %v467_v33 = vpop.f32.mrf.mxu1 }
  0xb9   : > { %v468_v35 = vadd.f32 %v3266_v12, %v467_v33  ;;  %2755 = vmatmul.msk.bf16.vlgmr.msrb.gmra.mxu3 %vm563_vm1, %v557_v32 }
  0xbb   : > { %v540_v37 = vpack.c.bf16 %v468_v35, %v468_v35  ;;  %v2969_v35 = vld [vmem:[%s3805_s3] sm:$0xff] }
  0xbc   : > { %507 = vmatpush.bf16.msrb.mxu2 %v2969_v35 }
  0xbd   : > { %v592_v40 = vunpack.c.l.b16 %v540_v37 }
  0xbf   : > { %v593_v43 = vpack.c.b16 %v592_v40, %v591_v39  ;;  %2751 = vmatmul.msk.bf16.vlgmr.msrb.gmra.mxu2 %vm389_vm0, %v3239_v5 }
  0xc0   : > { %v470_v44 = vpop.f32.mrf.mxu1 }
  0xc1   : > { %v598_v46 = vsel %vm563_vm1, %v593_v43, 0  ;;  %v471_v49 = vadd.f32 %v3266_v12, %v470_v44 }
  0xc2   : > { %607 = vmatpush.bf16.xpose.msra.mxu3 %v598_v46 }
  0xc3   : > { %v541_v53 = vpack.c.bf16 %v471_v49, %v471_v49 }
  0xc5   : > { %v621_v59 = vunpack.c.l.b16 %v541_v53 }
  0xc8   : > { %v472_v52 = vpop.f32.mrf.mxu1 }
  0xc9   : > { %v473_v54 = vadd.f32 %v3266_v12, %v472_v52  ;;  %2756 = vmatmul.msk.bf16.vlgmr.msra.gmra.mxu3 %vm563_vm1, %v588_v50 }
  0xcb   : > { %v542_v57 = vpack.c.bf16 %v473_v54, %v473_v54 }
  0xcd   : > { %v622_v60 = vunpack.c.l.b16 %v542_v57 }
  0xcf   : > { %v623_v63 = vpack.c.b16 %v622_v60, %v621_v59  ;;  %2752 = vmatmul.msk.bf16.gmra.mxu2 %vm389_vm0, %v3233_v3 }
  0xd0   : > { %v475_v0 = vpop.f32.mrf.mxu1 }
  0xd1   : > { %v628_v1 = vsel %vm563_vm1, %v623_v63, 0  ;;  %v476_v8 = vadd.f32 %v3266_v12, %v475_v0 }
  0xd2   : > { %637 = vmatpush.bf16.xpose.msrb.mxu3 %v628_v1 }
  0xd3   : > { %v543_v11 = vpack.c.bf16 %v476_v8, %v476_v8 }
  0xd5   : > { %v651_v18 = vunpack.c.l.b16 %v543_v11 }
  0xd8   : > { %v477_v13 = vpop.f32.mrf.mxu1 }
  0xd9   : > { %v478_v15 = vadd.f32 %v3266_v12, %v477_v13  ;;  %2757 = vmatmul.msk.bf16.vlgmr.msrb.gmra.mxu3 %vm563_vm1, %v618_v10 }
  0xdb   : > { %v544_v19 = vpack.c.bf16 %v478_v15, %v478_v15 }
  0xdd   : > { %v652_v21 = vunpack.c.l.b16 %v544_v19 }
  0xdf   : > { %v653_v23 = vpack.c.b16 %v652_v21, %v651_v18  ;;  %2753 = vmatmul.msk.bf16.gmra.mxu2 %vm389_vm0, %v3246_v6 }
  0xe1   : > { %v658_v26 = vsel %vm563_vm1, %v653_v23, 0 }
  0xe2   : > { %667 = vmatpush.bf16.xpose.msra.mxu3 %v658_v26 }
  0xe9   : > { %2758 = vmatmul.msk.bf16.vlgmr.msra.gmra.mxu3 %vm563_vm1, %v648_v27  ;;  %v3005_v27 = vld [vmem:[%s3809_s7] ss:$0 sm:$0xff] }
  0xef   : > { %2754 = vmatmul.msk.bf16.gmra.mxu2 %vm389_vm0, %v3253_v7 }
 0x13c   : > { %v579_v12 = vpop.f32.mrf.mxu3 }
 0x13d   : > { %v675_v28 = vsel %vm674_vm2, %v579_v12, -inf }
 0x13e   : > { %676 = vmax.xlane.f32.xlu1 %v675_v28 }
 0x142   : > { %v509_v26 = vpop.f32.mrf.mxu2 }
 0x143   : > { %v510_v28 = vadd.f32 %v3005_v27, %v509_v26 }
 0x144   : > { %v581_v16 = vpop.f32.mrf.mxu3 }
 0x145   : > { %v678_v29 = vsel %vm674_vm2, %v581_v16, -inf }
 0x146   : > { %679 = vmax.xlane.f32.xlu1 %v678_v29  ;;  %v545_v29 = vpack.c.bf16 %v510_v28, %v510_v28 }
 0x14c   : > { %v609_v30 = vpop.f32.mrf.mxu3 }
 0x14d   : > { %v681_v31 = vsel %vm674_vm2, %v609_v30, -inf }
 0x14e   : > { %682 = vmax.xlane.f32.xlu2 %v681_v31  ;;  %v778_v31 = vunpack.c.l.b16 %v545_v29 }
 0x154   : > { %v611_v32 = vpop.f32.mrf.mxu3 }
 0x155   : > { %v684_v33 = vsel %vm674_vm2, %v611_v32, -inf }
 0x156   : > { %685 = vmax.xlane.f32.xlu2 %v684_v33 }
 0x15c   : > { %v639_v36 = vpop.f32.mrf.mxu3 }
 0x15d   : > { %v687_v37 = vsel %vm674_vm2, %v639_v36, -inf }
 0x15e   : > { %688 = vmax.xlane.f32.xlu0 %v687_v37 }
 0x164   : > { %v641_v38 = vpop.f32.mrf.mxu3 }
 0x165   : > { %v690_v39 = vsel %vm674_vm2, %v641_v38, -inf }
 0x166   : > { %691 = vmax.xlane.f32.xlu0 %v690_v39 }
 0x16c   : > { %v669_v40 = vpop.f32.mrf.mxu3 }
 0x16d   : > { %v693_v41 = vsel %vm674_vm2, %v669_v40, -inf }
 0x16e   : > { %694 = vmax.xlane.f32.xlu0 %v693_v41 }
 0x174   : > { %v671_v42 = vpop.f32.mrf.mxu3 }
 0x175   : > { %v696_v43 = vsel %vm674_vm2, %v671_v42, -inf }
 0x176   : > { %697 = vmax.xlane.f32.xlu1 %v696_v43 }
 0x1b1   : > { %v677_v44 = vpop.xlane.xlu1 %676 }
 0x1b2   : > { %v699_v45 = vsub.f32 %v579_v12, %v677_v44  ;;  %v511_v12 = vpop.f32.mrf.mxu2 }
 0x1b4   : > { %v707_v46 = vmul.f32 1.442695, %v699_v45 }
 0x1b6   : > { %3016 = vpow2.f32 %v707_v46 }
 0x1b9   : > { %v680_v53 = vpop.xlane.xlu1 %679 }
 0x1ba   : > { %v700_v57 = vsub.f32 %v581_v16, %v680_v53  ;;  %v512_v16 = vadd.f32 %v3005_v27, %v511_v12  ;;  %v514_v34 = vpop.f32.mrf.mxu2 }
 0x1bb   : > { %v515_v35 = vadd.f32 %v3005_v27, %v514_v34 }
 0x1bc   : > { %v3319_v47 = vpop.eup %3016  ;;  %v709_v60 = vmul.f32 1.442695, %v700_v57 }
 0x1bd   : > { %v723_v48 = vsel %vm674_vm2, %v3319_v47, 0.0 }
 0x1be   : > { %724 = vadd.xlane.f32.xlu1 %v723_v48 }
 0x1c1   : > { %v683_v49 = vpop.xlane.xlu2 %682 }
 0x1c2   : > { %v701_v0 = vsub.f32 %v609_v30, %v683_v49  ;;  %v546_v30 = vpack.c.bf16 %v512_v16, %v512_v16  ;;  %v516_v37 = vpop.f32.mrf.mxu2 }
 0x1c4   : > { %v711_v4 = vmul.f32 1.442695, %v701_v0 }
 0x1c9   : > { %v686_v50 = vpop.xlane.xlu2 %685 }
 0x1ca   : > { %v702_v51 = vsub.f32 %v611_v32, %v686_v50  ;;  %v779_v32 = vunpack.c.l.b16 %v546_v30  ;;  %v519_v43 = vpop.f32.mrf.mxu2 }
 0x1cb   : > { %v520_v44 = vadd.f32 %v3005_v27, %v519_v43 }
 0x1cc   : > { %v713_v52 = vmul.f32 1.442695, %v702_v51  ;;  %v780_v33 = vpack.c.b16 %v779_v32, %v778_v31 }
 0x1cd   : > { %v549_v45 = vpack.c.bf16 %v520_v44, %v520_v44 }
 0x1ce   : > { %3018 = vpow2.f32 %v713_v52  ;;  %792 = vmatpush.bf16.msrb.mxu0 %v780_v33 }
 0x1cf   : > { %v834_v49 = vunpack.c.l.b16 %v549_v45 }
 0x1d1   : > { %v689_v54 = vpop.xlane.xlu0 %688 }
 0x1d2   : > { %v703_v55 = vsub.f32 %v639_v36, %v689_v54  ;;  %v547_v36 = vpack.c.bf16 %v515_v35, %v515_v35  ;;  %v521_v46 = vpop.f32.mrf.mxu2 }
 0x1d3   : > { %v522_v48 = vadd.f32 %v3005_v27, %v521_v46 }
 0x1d4   : > { %v3323_v56 = vpop.eup %3018  ;;  %v715_v58 = vmul.f32 1.442695, %v703_v55  ;;  %v806_v39 = vunpack.c.l.b16 %v547_v36 }
 0x1d5   : > { %v732_v59 = vsel %vm674_vm2, %v3323_v56, 0.0  ;;  %v550_v50 = vpack.c.bf16 %v522_v48, %v522_v48 }
 0x1d6   : > { %3020 = vpow2.f32 %v715_v58  ;;  %733 = vadd.xlane.f32.xlu1 %v732_v59 }
 0x1d7   : > { %3022 = vpow2.f32 %v709_v60  ;;  %v835_v51 = vunpack.c.l.b16 %v550_v50 }
 0x1d9   : > { %v692_v61 = vpop.xlane.xlu0 %691  ;;  %v836_v52 = vpack.c.b16 %v835_v51, %v834_v49 }
 0x1da   : > { %v704_v62 = vsub.f32 %v641_v38, %v692_v61  ;;  %v517_v38 = vadd.f32 %v3005_v27, %v516_v37  ;;  %v524_v53 = vpop.f32.mrf.mxu2 }
 0x1db   : > { %848 = vmatpush.bf16.msra.mxu2 %v836_v52  ;;  %v525_v55 = vadd.f32 %v3005_v27, %v524_v53  ;;  %v2975_v53 = vld [vmem:[%s3805_s3 + $0x10] sm:$0xff] }
 0x1dc   : > { %v3327_v63 = vpop.eup %3020  ;;  %v717_v1 = vmul.f32 1.442695, %v704_v62  ;;  %v2974_v62 = vld [vmem:[%s3804_s2 + $0x18] sm:$0xff] }
 0x1dd   : > { %v735_v2 = vsel %vm674_vm2, %v3327_v63, 0.0  ;;  %v3331_v9 = vpop.eup %3022  ;;  %v551_v60 = vpack.c.bf16 %v525_v55, %v525_v55 }
 0x1de   : > { %3024 = vpow2.f32 %v717_v1  ;;  %736 = vadd.xlane.f32.xlu2 %v735_v2  ;;  %v726_v14 = vsel %vm674_vm2, %v3331_v9, 0.0 }
 0x1df   : > { %3026 = vpow2.f32 %v711_v4  ;;  %v862_v0 = vunpack.c.l.b16 %v551_v60  ;;  %1020 = vmatpush.bf16.msrb.mxu2 %v2974_v62  ;;  %v2973_v4 = vld [vmem:[%s3804_s2 + $0x10] sm:$0xff] }
 0x1e1   : > { %v695_v8 = vpop.xlane.xlu0 %694 }
 0x1e2   : > { %v705_v10 = vsub.f32 %v669_v40, %v695_v8  ;;  %v548_v40 = vpack.c.bf16 %v517_v38, %v517_v38  ;;  %v526_v54 = vpop.f32.mrf.mxu2 }
 0x1e3   : > { %v527_v57 = vadd.f32 %v3005_v27, %v526_v54  ;;  %1021 = vmatpush.bf16.msrb.mxu2 %v2973_v4 }
 0x1e4   : > { %v3333_v11 = vpop.eup %3024  ;;  %v719_v13 = vmul.f32 1.442695, %v705_v10  ;;  %v807_v41 = vunpack.c.l.b16 %v548_v40 }
 0x1e5   : > { %v738_v15 = vsel %vm674_vm2, %v3333_v11, 0.0  ;;  %v3339_v18 = vpop.eup %3026  ;;  %v552_v61 = vpack.c.bf16 %v527_v57, %v527_v57 }
 0x1e6   : > { %3028 = vpow2.f32 %v719_v13  ;;  %727 = vadd.xlane.f32.xlu2 %v726_v14  ;;  %739 = vadd.xlane.f32.xlu0 %v738_v15  ;;  %v729_v22 = vsel %vm674_vm2, %v3339_v18, 0.0  ;;  %v2972_v13 = vld [vmem:[%s3803_s1 + $0x18] sm:$0xff] }
 0x1e7   : > { %v863_v1 = vunpack.c.l.b16 %v552_v61 }
 0x1e9   : > { %v698_v17 = vpop.xlane.xlu1 %697  ;;  %v864_v2 = vpack.c.b16 %v863_v1, %v862_v0  ;;  %v3412_v0 = vld [vmem:[%s3808_s6 + $0x1] ss:$0 sm:$0xff] }
 0x1ea   : > { %v706_v19 = vsub.f32 %v671_v42, %v698_v17  ;;  %v808_v42 = vpack.c.b16 %v807_v41, %v806_v39 }
 0x1eb   : > { %876 = vmatpush.bf16.msrb.mxu3 %v864_v2 }
 0x1ec   : > { %v3341_v20 = vpop.eup %3028  ;;  %v721_v21 = vmul.f32 1.442695, %v706_v19  ;;  %820 = vmatpush.bf16.msra.mxu1 %v808_v42  ;;  %v2971_v19 = vld [vmem:[%s3803_s1 + $0x10] sm:$0xff] }
 0x1ed   : > { %v741_v23 = vsel %vm674_vm2, %v3341_v20, 0.0 }
 0x1ee   : > { %3030 = vpow2.f32 %v721_v21  ;;  %730 = vadd.xlane.f32.xlu0 %v729_v22  ;;  %742 = vadd.xlane.f32.xlu2 %v741_v23 }
 0x1f0   : > { %969 = vmatpush.bf16.msrb.mxu1 %v2972_v13 }
 0x1f4   : > { %v3347_v24 = vpop.eup %3030  ;;  %970 = vmatpush.bf16.msrb.mxu1 %v2971_v19 }
 0x1f5   : > { %v744_v25 = vsel %vm674_vm2, %v3347_v24, 0.0 }
 0x1f6   : > { %745 = vadd.xlane.f32.xlu0 %v744_v25 }
 0x231   : > { %v725_v58 = vpop.xlane.xlu1 %724 }
 0x232   : > { %3032 = vrcp.f32 %v725_v58 }
 0x238   : > { %v3033_v14 = vpop.eup %3032 }
 0x239   : > { %v755_v21 = vmul.f32 %v3033_v14, %v3319_v47 }
 0x23b   : > { %v763_v26 = vpack.c.bf16 %v755_v21, %v755_v21 }
 0x23d   : > { %v773_v47 = vunpack.c.l.b16 %v763_v26 }
 0x249   : > { %v734_v15 = vpop.xlane.xlu1 %733 }
 0x251   : > { %v737_v59 = vpop.xlane.xlu2 %736 }
 0x252   : > { %3034 = vrcp.f32 %v737_v59 }
 0x258   : > { %v3035_v17 = vpop.eup %3034 }
 0x259   : > { %v728_v8 = vpop.xlane.xlu2 %727  ;;  %v740_v10 = vpop.xlane.xlu0 %739  ;;  %v759_v22 = vmul.f32 %v3035_v17, %v3327_v63 }
 0x25a   : > { %3036 = vrcp.f32 %v728_v8 }
 0x25b   : > { %3038 = vrcp.f32 %v740_v10  ;;  %v767_v16 = vpack.c.bf16 %v759_v22, %v759_v22 }
 0x25c   : > { %3040 = vrcp.f32 %v734_v15 }
 0x25d   : > { %v829_v34 = vunpack.c.l.b16 %v767_v16 }
 0x260   : > { %v3037_v23 = vpop.eup %3036 }
 0x261   : > { %v3039_v25 = vpop.eup %3038  ;;  %v756_v27 = vmul.f32 %v3037_v23, %v3331_v9  ;;  %v743_v12 = vpop.xlane.xlu2 %742 }
 0x262   : > { %v731_v28 = vpop.xlane.xlu0 %730  ;;  %v760_v29 = vmul.f32 %v3039_v25, %v3333_v11  ;;  %v3041_v30 = vpop.eup %3040 }
 0x263   : > { %v764_v31 = vpack.c.bf16 %v756_v27, %v756_v27  ;;  %3042 = vrcp.f32 %v731_v28  ;;  %v758_v63 = vmul.f32 %v3041_v30, %v3323_v56 }
 0x264   : > { %v768_v32 = vpack.c.bf16 %v760_v29, %v760_v29  ;;  %3044 = vrcp.f32 %v743_v12 }
 0x265   : > { %v774_v33 = vunpack.c.l.b16 %v764_v31  ;;  %v766_v40 = vpack.c.bf16 %v758_v63, %v758_v63 }
 0x266   : > { %v830_v35 = vunpack.c.l.b16 %v768_v32 }
 0x267   : > { %v775_v36 = vpack.c.b16 %v774_v33, %v773_v47  ;;  %v802_v43 = vunpack.c.l.b16 %v766_v40 }
 0x268   : > { %v831_v37 = vpack.c.b16 %v830_v35, %v829_v34 }
 0x269   : > { %v3043_v38 = vpop.eup %3042  ;;  %2759 = vmatmul.msk.bf16.vlgmr.msrb.gmra.mxu0 %vm674_vm2, %v775_v36 }
 0x26a   : > { %v746_v9 = vpop.xlane.xlu0 %745  ;;  %v3045_v39 = vpop.eup %3044  ;;  %v757_v11 = vmul.f32 %v3043_v38, %v3339_v18  ;;  %2761 = vmatmul.msk.bf16.vlgmr.msra.gmra.mxu2 %vm674_vm2, %v831_v37  ;;  %v887_v18 = vld [vmem:[%s3806_s4] sm:$0xf] }
 0x26b   : > { %3046 = vrcp.f32 %v746_v9  ;;  %v761_v42 = vmul.f32 %v3045_v39, %v3341_v20  ;;  %v902_v20 = vsel %vm900_vm3, %v887_v18, 0 }
 0x26c   : > { %v765_v41 = vpack.c.bf16 %v757_v11, %v757_v11  ;;  %911 = vmatpush.bf16.msra.mxu0 %v902_v20 }
 0x26d   : > { %v769_v46 = vpack.c.bf16 %v761_v42, %v761_v42 }
 0x26e   : > { %v801_v56 = vunpack.c.l.b16 %v765_v41 }
 0x26f   : > { %v857_v50 = vunpack.c.l.b16 %v769_v46 }
 0x270   : > { %v803_v45 = vpack.c.b16 %v802_v43, %v801_v56 }
 0x271   : > { %v3047_v44 = vpop.eup %3046 }
 0x272   : > { %v762_v48 = vmul.f32 %v3047_v44, %v3347_v24  ;;  %2760 = vmatmul.msk.bf16.vlgmr.msra.gmra.mxu1 %vm674_vm2, %v803_v45  ;;  %v2976_v24 = vld [vmem:[%s3805_s3 + $0x18] sm:$0xff] }
 0x273   : > { %1071 = vmatpush.bf16.msra.mxu3 %v2976_v24 }
 0x274   : > { %v770_v49 = vpack.c.bf16 %v762_v48, %v762_v48 }
 0x276   : > { %v858_v51 = vunpack.c.l.b16 %v770_v49 }
 0x277   : > { %1072 = vmatpush.bf16.msra.mxu3 %v2975_v53 }
 0x278   : > { %v859_v52 = vpack.c.b16 %v858_v51, %v857_v50 }
 0x27a   : > { %2762 = vmatmul.msk.bf16.vlgmr.msrb.gmra.mxu3 %vm674_vm2, %v859_v52  ;;  %2797 = vmatmul.msk.bf16.vlgmr.msrb.gmra.mxu2 %vm389_vm0, %v3239_v5 }
 0x282   : > { %2780 = vmatmul.msk.bf16.vlgmr.msrb.gmra.mxu1 %vm389_vm0, %v3239_v5 }
 0x28a   : > { %2798 = vmatmul.msk.bf16.gmra.mxu2 %vm389_vm0, %v3233_v3  ;;  %2814 = vmatmul.msk.bf16.vlgmr.msra.gmra.mxu3 %vm389_vm0, %v3239_v5 }
 0x292   : > { %2781 = vmatmul.msk.bf16.gmra.mxu1 %vm389_vm0, %v3233_v3 }
 0x29a   : > { %2799 = vmatmul.msk.bf16.gmra.mxu2 %vm389_vm0, %v3246_v6  ;;  %2815 = vmatmul.msk.bf16.gmra.mxu3 %vm389_vm0, %v3233_v3 }
 0x2a2   : > { %2782 = vmatmul.msk.bf16.gmra.mxu1 %vm389_vm0, %v3246_v6 }
 0x2aa   : > { %2800 = vmatmul.msk.bf16.gmra.mxu2 %vm389_vm0, %v3253_v7  ;;  %2816 = vmatmul.msk.bf16.gmra.mxu3 %vm389_vm0, %v3246_v6  ;;  %v3007_v6 = vld [vmem:[%s3807_s5 + $0x1] ss:$0 sm:$0xff] }
 0x2b2   : > { %2783 = vmatmul.msk.bf16.gmra.mxu1 %vm389_vm0, %v3253_v7 }
 0x2ba   : > { %2817 = vmatmul.msk.bf16.gmra.mxu3 %vm389_vm0, %v3253_v7 }
 0x2e6   : > { %v794_v54 = vpop.f32.mrf.mxu0 }
 0x2ed   : > { %v850_v55 = vpop.f32.mrf.mxu2 }
 0x2ee   : > { %v796_v57 = vpop.f32.mrf.mxu0 }
 0x2ef   : > { %v883_v58 = vpack.c.bf16 %v796_v57, %v794_v54  ;;  %v822_v59 = vpop.f32.mrf.mxu1 }
 0x2f1   : > { %2763 = vmatmul.msk.bf16.vlgmr.msra.gmra.mxu0 %vm563_vm1, %v883_v58 }
 0x2f5   : > { %v852_v60 = vpop.f32.mrf.mxu2 }
 0x2f6   : > { %v885_v22 = vpack.c.bf16 %v852_v60, %v850_v55 }
 0x2f7   : > { %v824_v61 = vpop.f32.mrf.mxu1 }
 0x2f8   : > { %v884_v1 = vpack.c.bf16 %v824_v61, %v822_v59 }
 0x2fd   : > { %v1023_v62 = vpop.f32.mrf.mxu2  ;;  %v878_v25 = vpop.f32.mrf.mxu3 }
 0x2fe   : > { %v1024_v5 = vadd.f32 %v3412_v0, %v1023_v62 }
 0x2ff   : > { %v972_v2 = vpop.f32.mrf.mxu1 }
 0x300   : > { %v1102_v8 = vpack.c.bf16 %v1024_v5, %v1024_v5  ;;  %v973_v42 = vadd.f32 %v3007_v6, %v972_v2 }
 0x301   : > { %2764 = vmatmul.msk.bf16.gmra.mxu0 %vm563_vm1, %v884_v1 }
 0x302   : > { %v1125_v14 = vunpack.c.l.b16 %v1102_v8  ;;  %v1094_v50 = vpack.c.bf16 %v973_v42, %v973_v42 }
 0x304   : > { %v1120_v54 = vunpack.c.l.b16 %v1094_v50 }
 0x305   : > { %v1025_v4 = vpop.f32.mrf.mxu2  ;;  %v880_v33 = vpop.f32.mrf.mxu3 }
 0x306   : > { %v1026_v10 = vadd.f32 %v3412_v0, %v1025_v4  ;;  %v886_v38 = vpack.c.bf16 %v880_v33, %v878_v25 }
 0x307   : > { %v974_v3 = vpop.f32.mrf.mxu1 }
 0x308   : > { %v1103_v13 = vpack.c.bf16 %v1026_v10, %v1026_v10  ;;  %v975_v11 = vadd.f32 %v3007_v6, %v974_v3 }
 0x30a   : > { %v1126_v15 = vunpack.c.l.b16 %v1103_v13  ;;  %v1095_v45 = vpack.c.bf16 %v975_v11, %v975_v11 }
 0x30c   : > { %v1127_v17 = vpack.c.b16 %v1126_v15, %v1125_v14  ;;  %v1121_v20 = vunpack.c.l.b16 %v1095_v45 }
 0x30d   : > { %v1028_v19 = vpop.f32.mrf.mxu2 }
 0x30e   : > { %v1132_v21 = vsel %vm563_vm1, %v1127_v17, 0  ;;  %v1029_v26 = vadd.f32 %v3412_v0, %v1028_v19  ;;  %v1122_v59 = vpack.c.b16 %v1121_v20, %v1120_v54 }
 0x30f   : > { %v977_v23 = vpop.f32.mrf.mxu1  ;;  %1141 = vmatpush.bf16.xpose.msrb.mxu0 %v1132_v21 }
 0x310   : > { %v1104_v12 = vpack.c.bf16 %v1029_v26, %v1029_v26  ;;  %v978_v32 = vadd.f32 %v3007_v6, %v977_v23 }
 0x311   : > { %2765 = vmatmul.msk.bf16.gmra.mxu0 %vm563_vm1, %v885_v22 }
 0x312   : > { %v1155_v31 = vunpack.c.l.b16 %v1104_v12  ;;  %v1096_v36 = vpack.c.bf16 %v978_v32, %v978_v32  ;;  %v1074_v12 = vpop.f32.mrf.mxu3 }
 0x314   : > { %v1150_v7 = vunpack.c.l.b16 %v1096_v36 }
 0x315   : > { %v1030_v27 = vpop.f32.mrf.mxu2 }
 0x316   : > { %v1031_v28 = vadd.f32 %v3412_v0, %v1030_v27 }
 0x317   : > { %v979_v16 = vpop.f32.mrf.mxu1 }
 0x318   : > { %v1105_v29 = vpack.c.bf16 %v1031_v28, %v1031_v28  ;;  %v980_v30 = vadd.f32 %v3007_v6, %v979_v16 }
 0x31a   : > { %v1156_v47 = vunpack.c.l.b16 %v1105_v29  ;;  %v1097_v34 = vpack.c.bf16 %v980_v30, %v980_v30  ;;  %v1076_v29 = vpop.f32.mrf.mxu3 }
 0x31c   : > { %v1157_v63 = vpack.c.b16 %v1156_v47, %v1155_v31  ;;  %v1151_v39 = vunpack.c.l.b16 %v1097_v34 }
 0x31d   : > { %v1033_v35 = vpop.f32.mrf.mxu2 }
 0x31e   : > { %v1162_v37 = vsel %vm563_vm1, %v1157_v63, 0  ;;  %v1034_v40 = vadd.f32 %v3412_v0, %v1033_v35  ;;  %v1152_v41 = vpack.c.b16 %v1151_v39, %v1150_v7 }
 0x31f   : > { %v982_v9 = vpop.f32.mrf.mxu1  ;;  %1171 = vmatpush.bf16.xpose.msra.mxu1 %v1162_v37 }
 0x320   : > { %v1106_v56 = vpack.c.bf16 %v1034_v40, %v1034_v40  ;;  %v983_v52 = vadd.f32 %v3007_v6, %v982_v9 }
 0x321   : > { %2766 = vmatmul.msk.bf16.gmra.mxu0 %vm563_vm1, %v886_v38 }
 0x322   : > { %v1185_v51 = vunpack.c.l.b16 %v1106_v56  ;;  %v1098_v57 = vpack.c.bf16 %v983_v52, %v983_v52  ;;  %v1079_v34 = vpop.f32.mrf.mxu3 }
 0x324   : > { %v1180_v1 = vunpack.c.l.b16 %v1098_v57 }
 0x325   : > { %v1035_v43 = vpop.f32.mrf.mxu2 }
 0x326   : > { %v1036_v44 = vadd.f32 %v3412_v0, %v1035_v43  ;;  %2819 = vmatmul.msk.bf16.vlgmr.msra.gmra.mxu1 %vm563_vm1, %v1152_v41 }
 0x327   : > { %v984_v46 = vpop.f32.mrf.mxu1 }
 0x328   : > { %v1107_v48 = vpack.c.bf16 %v1036_v44, %v1036_v44  ;;  %v985_v49 = vadd.f32 %v3007_v6, %v984_v46 }
 0x32a   : > { %v1186_v18 = vunpack.c.l.b16 %v1107_v48  ;;  %v1099_v53 = vpack.c.bf16 %v985_v49, %v985_v49  ;;  %v1081_v38 = vpop.f32.mrf.mxu3 }
 0x32c   : > { %v1187_v24 = vpack.c.b16 %v1186_v18, %v1185_v51  ;;  %v1181_v61 = vunpack.c.l.b16 %v1099_v53 }
 0x32d   : > { %v1038_v55 = vpop.f32.mrf.mxu2 }
 0x32e   : > { %v1192_v58 = vsel %vm563_vm1, %v1187_v24, 0  ;;  %v1039_v62 = vadd.f32 %v3412_v0, %v1038_v55  ;;  %v1182_v2 = vpack.c.b16 %v1181_v61, %v1180_v1 }
 0x32f   : > { %1201 = vmatpush.bf16.xpose.msra.mxu2 %v1192_v58  ;;  %v987_v60 = vpop.f32.mrf.mxu1 }
 0x330   : > { %v1108_v5 = vpack.c.bf16 %v1039_v62, %v1039_v62  ;;  %v988_v8 = vadd.f32 %v3007_v6, %v987_v60 }
 0x331   : > { %2818 = vmatmul.msk.bf16.vlgmr.msrb.gmra.mxu0 %vm563_vm1, %v1122_v59 }
 0x332   : > { %v1215_v13 = vunpack.c.l.b16 %v1108_v5  ;;  %v1100_v17 = vpack.c.bf16 %v988_v8, %v988_v8  ;;  %v1084_v42 = vpop.f32.mrf.mxu3 }
 0x334   : > { %v1210_v23 = vunpack.c.l.b16 %v1100_v17 }
 0x335   : > { %v1040_v4 = vpop.f32.mrf.mxu2 }
 0x336   : > { %v1041_v10 = vadd.f32 %v3412_v0, %v1040_v4  ;;  %2820 = vmatmul.msk.bf16.vlgmr.msra.gmra.mxu2 %vm563_vm1, %v1182_v2  ;;  %v3009_v0 = vld [vmem:[%s3809_s7 + $0x1] ss:$0 sm:$0xff] }
 0x337   : > { %v989_v3 = vpop.f32.mrf.mxu1  ;;  %v1075_v28 = vadd.f32 %v3009_v0, %v1074_v12  ;;  %v1077_v30 = vadd.f32 %v3009_v0, %v1076_v29  ;;  %v1080_v35 = vadd.f32 %v3009_v0, %v1079_v34  ;;  %v1082_v9 = vadd.f32 %v3009_v0, %v1081_v38 }
 0x338   : > { %v1109_v14 = vpack.c.bf16 %v1041_v10, %v1041_v10  ;;  %v990_v15 = vadd.f32 %v3007_v6, %v989_v3  ;;  %v1085_v43 = vadd.f32 %v3009_v0, %v1084_v42 }
 0x339   : > { %v1110_v6 = vpack.c.bf16 %v1075_v28, %v1075_v28  ;;  %v1111_v32 = vpack.c.bf16 %v1077_v30, %v1077_v30  ;;  %v1112_v37 = vpack.c.bf16 %v1080_v35, %v1080_v35  ;;  %v1113_v7 = vpack.c.bf16 %v1082_v9, %v1082_v9 }
 0x33a   : > { %v1216_v19 = vunpack.c.l.b16 %v1109_v14  ;;  %v1101_v21 = vpack.c.bf16 %v990_v15, %v990_v15  ;;  %v1114_v44 = vpack.c.bf16 %v1085_v43, %v1085_v43  ;;  %v1086_v45 = vpop.f32.mrf.mxu3 }
 0x33b   : > { %v1341_v31 = vunpack.c.l.b16 %v1110_v6  ;;  %v1342_v33 = vunpack.c.l.b16 %v1111_v32  ;;  %v1369_v39 = vunpack.c.l.b16 %v1112_v37  ;;  %v1370_v11 = vunpack.c.l.b16 %v1113_v7 }
 0x33c   : > { %v1217_v22 = vpack.c.b16 %v1216_v19, %v1215_v13  ;;  %v1211_v25 = vunpack.c.l.b16 %v1101_v21  ;;  %v1087_v46 = vadd.f32 %v3009_v0, %v1086_v45  ;;  %v1397_v48 = vunpack.c.l.b16 %v1114_v44 }
 0x33d   : > { %v1343_v63 = vpack.c.b16 %v1342_v33, %v1341_v31  ;;  %v1371_v41 = vpack.c.b16 %v1370_v11, %v1369_v39 }
 0x33e   : > { %v1222_v26 = vsel %vm563_vm1, %v1217_v22, 0  ;;  %v1212_v27 = vpack.c.b16 %v1211_v25, %v1210_v23  ;;  %v1115_v49 = vpack.c.bf16 %v1087_v46, %v1087_v46 }
 0x33f   : > { %1231 = vmatpush.bf16.xpose.msrb.mxu3 %v1222_v26  ;;  %1355 = vmatpush.bf16.msra.mxu0 %v1343_v63 }
 0x340   : > { %1383 = vmatpush.bf16.msrb.mxu1 %v1371_v41  ;;  %v1398_v51 = vunpack.c.l.b16 %v1115_v49 }
 0x342   : > { %v1399_v52 = vpack.c.b16 %v1398_v51, %v1397_v48  ;;  %v1089_v18 = vpop.f32.mrf.mxu3 }
 0x343   : > { %v1090_v20 = vadd.f32 %v3009_v0, %v1089_v18 }
 0x344   : > { %1411 = vmatpush.bf16.msrb.mxu2 %v1399_v52 }
 0x345   : > { %v1116_v53 = vpack.c.bf16 %v1090_v20, %v1090_v20 }
 0x346   : > { %2821 = vmatmul.msk.bf16.vlgmr.msrb.gmra.mxu3 %vm563_vm1, %v1212_v27 }
 0x347   : > { %v1425_v57 = vunpack.c.l.b16 %v1116_v53 }
 0x34a   : > { %v1091_v54 = vpop.f32.mrf.mxu3 }
 0x34b   : > { %v1092_v55 = vadd.f32 %v3009_v0, %v1091_v54 }
 0x34d   : > { %v1117_v58 = vpack.c.bf16 %v1092_v55, %v1092_v55 }
 0x34f   : > { %v1426_v60 = vunpack.c.l.b16 %v1117_v58 }
 0x351   : > { %v1427_v61 = vpack.c.b16 %v1426_v60, %v1425_v57 }
 0x353   : > { %1439 = vmatpush.bf16.msra.mxu3 %v1427_v61 }
 0x36e   : > { %v3443_v16 = vpop.f32.mrf.mxu0 }
 0x376   : > { %v3445_v47 = vpop.f32.mrf.mxu0 }
 0x37e   : > { %v3447_v36 = vpop.f32.mrf.mxu0 }
 0x386   : > { %v3449_v40 = vpop.f32.mrf.mxu0 }
 0x38e   : > { %v3451_v56 = vpop.f32.mrf.mxu0 }
 0x396   : > { %v3453_v50 = vpop.f32.mrf.mxu0 }
 0x39e   : > { %v3455_v24 = vpop.f32.mrf.mxu0 }
 0x3a3   : > { %v1173_v2 = vpop.f32.mrf.mxu1 }
 0x3a4   : > { %v1244_v13 = vsel %vm674_vm2, %v1173_v2, -inf }
 0x3a6   : > { %v3457_v59 = vpop.f32.mrf.mxu0 }
 0x3ab   : > { %v1175_v3 = vpop.f32.mrf.mxu1 }
 0x3ac   : > { %v1247_v15 = vsel %vm674_vm2, %v1175_v3, -inf }
 0x3ae   : > { %v1143_v62 = vpop.f32.mrf.mxu0 }
 0x3af   : > { %v1238_v1 = vsel %vm674_vm2, %v1143_v62, -inf }
 0x3b0   : > { %1239 = vmax.xlane.f32.xlu1 %v1238_v1 }
 0x3b6   : > { %v1145_v5 = vpop.f32.mrf.mxu0 }
 0x3b7   : > { %v1241_v4 = vsel %vm674_vm2, %v1145_v5, -inf }
 0x3b8   : > { %1242 = vmax.xlane.f32.xlu2 %v1241_v4  ;;  %v2980_v4 = vld [vmem:[%s3804_s2 + $0x28] sm:$0xff] }
 0x3b9   : > { %v1203_v8 = vpop.f32.mrf.mxu2  ;;  %1583 = vmatpush.bf16.msra.mxu2 %v2980_v4 }
 0x3ba   : > { %v1250_v10 = vsel %vm674_vm2, %v1203_v8, -inf }
 0x3bb   : > { %1251 = vmax.xlane.f32.xlu0 %v1250_v10 }
 0x3c0   : > { %1245 = vmax.xlane.f32.xlu2 %v1244_v13 }
 0x3c1   : > { %v1205_v14 = vpop.f32.mrf.mxu2 }
 0x3c2   : > { %v1253_v17 = vsel %vm674_vm2, %v1205_v14, -inf }
 0x3c3   : > { %1248 = vmax.xlane.f32.xlu0 %v1247_v15  ;;  %1254 = vmax.xlane.f32.xlu1 %v1253_v17  ;;  %v2978_v17 = vld [vmem:[%s3803_s1 + $0x28] sm:$0xff] }
 0x3c4   : > { %1532 = vmatpush.bf16.msra.mxu1 %v2978_v17 }
 0x3c9   : > { %v1233_v19 = vpop.f32.mrf.mxu3 }
 0x3ca   : > { %v1256_v21 = vsel %vm674_vm2, %v1233_v19, -inf }
 0x3cb   : > { %1257 = vmax.xlane.f32.xlu1 %v1256_v21 }
 0x3d1   : > { %v1235_v22 = vpop.f32.mrf.mxu3 }
 0x3d2   : > { %v1259_v23 = vsel %vm674_vm2, %v1235_v22, -inf }
 0x3d3   : > { %1260 = vmax.xlane.f32.xlu2 %v1259_v23 }
 0x423   : > { %v1240_v25 = vpop.xlane.xlu1 %1239 }
 0x424   : > { %v1262_v26 = vsub.f32 %v1143_v62, %v1240_v25 }
 0x426   : > { %v1270_v27 = vmul.f32 1.442695, %v1262_v26  ;;  %v2977_v26 = vld [vmem:[%s3803_s1 + $0x20] sm:$0xff] }
 0x427   : > { %1533 = vmatpush.bf16.msra.mxu1 %v2977_v26 }
 0x428   : > { %3048 = vpow2.f32 %v1270_v27 }
 0x42b   : > { %v1243_v0 = vpop.xlane.xlu2 %1242 }
 0x42c   : > { %v1263_v12 = vsub.f32 %v1145_v5, %v1243_v0 }
 0x42e   : > { %v3049_v28 = vpop.eup %3048  ;;  %v1272_v6 = vmul.f32 1.442695, %v1263_v12  ;;  %v1252_v29 = vpop.xlane.xlu0 %1251 }
 0x42f   : > { %v1266_v30 = vsub.f32 %v1203_v8, %v1252_v29  ;;  %v1286_v31 = vsel %vm674_vm2, %v3049_v28, 0.0 }
 0x430   : > { %3050 = vpow2.f32 %v1272_v6  ;;  %1287 = vadd.xlane.f32.xlu0 %v1286_v31 }
 0x431   : > { %v1278_v32 = vmul.f32 1.442695, %v1266_v30 }
 0x433   : > { %3052 = vpow2.f32 %v1278_v32  ;;  %v1246_v33 = vpop.xlane.xlu2 %1245 }
 0x434   : > { %v1264_v63 = vsub.f32 %v1173_v2, %v1246_v33 }
 0x436   : > { %v3051_v34 = vpop.eup %3050  ;;  %v1274_v35 = vmul.f32 1.442695, %v1264_v63  ;;  %v1249_v37 = vpop.xlane.xlu0 %1248 }
 0x437   : > { %v1255_v38 = vpop.xlane.xlu1 %1254  ;;  %v1265_v9 = vsub.f32 %v1175_v3, %v1249_v37  ;;  %v1289_v7 = vsel %vm674_vm2, %v3051_v34, 0.0  ;;  %v2979_v3 = vld [vmem:[%s3804_s2 + $0x20] sm:$0xff] }
 0x438   : > { %v1267_v39 = vsub.f32 %v1205_v14, %v1255_v38  ;;  %3054 = vpow2.f32 %v1274_v35  ;;  %1290 = vadd.xlane.f32.xlu1 %v1289_v7  ;;  %1584 = vmatpush.bf16.msra.mxu2 %v2979_v3 }
 0x439   : > { %v3053_v11 = vpop.eup %3052  ;;  %v1276_v41 = vmul.f32 1.442695, %v1265_v9 }
 0x43a   : > { %v1280_v42 = vmul.f32 1.442695, %v1267_v39  ;;  %v1298_v43 = vsel %vm674_vm2, %v3053_v11, 0.0 }
 0x43b   : > { %3056 = vpow2.f32 %v1276_v41  ;;  %1299 = vadd.xlane.f32.xlu2 %v1298_v43 }
 0x43c   : > { %3058 = vpow2.f32 %v1280_v42 }
 0x43e   : > { %v3055_v44 = vpop.eup %3054 }
 0x43f   : > { %v1258_v45 = vpop.xlane.xlu1 %1257  ;;  %v1292_v48 = vsel %vm674_vm2, %v3055_v44, 0.0 }
 0x440   : > { %v1268_v46 = vsub.f32 %v1233_v19, %v1258_v45  ;;  %1293 = vadd.xlane.f32.xlu1 %v1292_v48 }
 0x441   : > { %v3057_v49 = vpop.eup %3056 }
 0x442   : > { %v1282_v51 = vmul.f32 1.442695, %v1268_v46  ;;  %v3059_v52 = vpop.eup %3058  ;;  %v1295_v18 = vsel %vm674_vm2, %v3057_v49, 0.0 }
 0x443   : > { %v1301_v20 = vsel %vm674_vm2, %v3059_v52, 0.0  ;;  %1296 = vadd.xlane.f32.xlu2 %v1295_v18 }
 0x444   : > { %3060 = vpow2.f32 %v1282_v51  ;;  %1302 = vadd.xlane.f32.xlu0 %v1301_v20  ;;  %v3496_v20 = vld [vmem:[%s3230_s21] sm:$0xff] }
 0x446   : > { %v1261_v53 = vpop.xlane.xlu2 %1260 }
 0x447   : > { %v1269_v54 = vsub.f32 %v1235_v22, %v1261_v53  ;;  %v3503_v53 = vld [vmem:[%s3230_s21 + $0x8] sm:$0xff] }
 0x449   : > { %v1284_v57 = vmul.f32 1.442695, %v1269_v54  ;;  %v3510_v54 = vld [vmem:[%s3230_s21 + $0x10] sm:$0xff] }
 0x44a   : > { %v3473_v55 = vpop.eup %3060 }
 0x44b   : > { %v1304_v58 = vsel %vm674_vm2, %v3473_v55, 0.0  ;;  %3062 = vpow2.f32 %v1284_v57  ;;  %v2826_v57 = vld [vmem:[%s3806_s4 + $0x4] sm:$0xf] }
 0x44c   : > { %1305 = vadd.xlane.f32.xlu0 %v1304_v58  ;;  %v1465_v58 = vsel %vm900_vm3, %v2826_v57, 0 }
 0x44d   : > { %1474 = vmatpush.bf16.msrb.mxu0 %v1465_v58 }
 0x451   : > { %v3063_v60 = vpop.eup %3062 }
 0x452   : > { %v1307_v61 = vsel %vm674_vm2, %v3063_v60, 0.0 }
 0x453   : > { %1308 = vadd.xlane.f32.xlu1 %v1307_v61  ;;  %v2982_v61 = vld [vmem:[%s3805_s3 + $0x28] sm:$0xff] }
 0x454   : > { %1634 = vmatpush.bf16.msrb.mxu3 %v2982_v61 }
 0x4a3   : > { %v1288_v62 = vpop.xlane.xlu0 %1287 }
 0x4a4   : > { %3064 = vrcp.f32 %v1288_v62  ;;  %v2981_v62 = vld [vmem:[%s3805_s3 + $0x20] sm:$0xff] }
 0x4a5   : > { %1635 = vmatpush.bf16.msrb.mxu3 %v2981_v62 }
 0x4aa   : > { %v3065_v2 = vpop.eup %3064 }
 0x4ab   : > { %v1291_v1 = vpop.xlane.xlu1 %1290  ;;  %v1318_v8 = vmul.f32 %v3065_v2, %v3049_v28 }
 0x4ac   : > { %3066 = vrcp.f32 %v1291_v1 }
 0x4ad   : > { %v1326_v13 = vpack.c.bf16 %v1318_v8, %v1318_v8 }
 0x4ae   : > { %v1300_v5 = vpop.xlane.xlu2 %1299 }
 0x4af   : > { %3068 = vrcp.f32 %v1300_v5  ;;  %v1336_v22 = vunpack.c.l.b16 %v1326_v13 }
 0x4b2   : > { %v3067_v10 = vpop.eup %3066 }
 0x4b3   : > { %v1319_v14 = vmul.f32 %v3067_v10, %v3051_v34  ;;  %v1294_v15 = vpop.xlane.xlu1 %1293 }
 0x4b4   : > { %3070 = vrcp.f32 %v1294_v15  ;;  %v3542_v15 = vld [vmem:[%s3808_s6 + $0x2] ss:$0 sm:$0xff] }
 0x4b5   : > { %v1327_v19 = vpack.c.bf16 %v1319_v14, %v1319_v14  ;;  %v3069_v27 = vpop.eup %3068 }
 0x4b6   : > { %v1297_v21 = vpop.xlane.xlu2 %1296  ;;  %v1322_v28 = vmul.f32 %v3069_v27, %v3053_v11 }
 0x4b7   : > { %v1337_v23 = vunpack.c.l.b16 %v1327_v19  ;;  %v1303_v25 = vpop.xlane.xlu0 %1302  ;;  %3072 = vrcp.f32 %v1297_v21 }
 0x4b8   : > { %3074 = vrcp.f32 %v1303_v25  ;;  %v1330_v33 = vpack.c.bf16 %v1322_v28, %v1322_v28 }
 0x4b9   : > { %v1338_v0 = vpack.c.b16 %v1337_v23, %v1336_v22 }
 0x4ba   : > { %v3071_v12 = vpop.eup %3070  ;;  %v1392_v39 = vunpack.c.l.b16 %v1330_v33 }
 0x4bb   : > { %v1320_v6 = vmul.f32 %v3071_v12, %v3055_v44  ;;  %2822 = vmatmul.msk.bf16.vlgmr.msra.gmra.mxu0 %vm674_vm2, %v1338_v0 }
 0x4bd   : > { %v3073_v29 = vpop.eup %3072  ;;  %v1328_v31 = vpack.c.bf16 %v1320_v6, %v1320_v6 }
 0x4be   : > { %v3075_v30 = vpop.eup %3074  ;;  %v1321_v32 = vmul.f32 %v3073_v29, %v3057_v49 }
 0x4bf   : > { %v1323_v63 = vmul.f32 %v3075_v30, %v3059_v52  ;;  %v1306_v34 = vpop.xlane.xlu0 %1305  ;;  %v1364_v38 = vunpack.c.l.b16 %v1328_v31 }
 0x4c0   : > { %v1329_v35 = vpack.c.bf16 %v1321_v32, %v1321_v32  ;;  %3076 = vrcp.f32 %v1306_v34 }
 0x4c1   : > { %v1331_v37 = vpack.c.bf16 %v1323_v63, %v1323_v63  ;;  %v3010_v63 = vld [vmem:[%s3807_s5 + $0x2] ss:$0 sm:$0xff] }
 0x4c2   : > { %v1365_v9 = vunpack.c.l.b16 %v1329_v35 }
 0x4c3   : > { %v1393_v7 = vunpack.c.l.b16 %v1331_v37 }
 0x4c4   : > { %v1366_v41 = vpack.c.b16 %v1365_v9, %v1364_v38 }
 0x4c5   : > { %v1394_v11 = vpack.c.b16 %v1393_v7, %v1392_v39 }
 0x4c6   : > { %v1309_v42 = vpop.xlane.xlu1 %1308  ;;  %2823 = vmatmul.msk.bf16.vlgmr.msrb.gmra.mxu1 %vm674_vm2, %v1366_v41  ;;  %v3077_v43 = vpop.eup %3076 }
 0x4c7   : > { %3078 = vrcp.f32 %v1309_v42  ;;  %2824 = vmatmul.msk.bf16.vlgmr.msrb.gmra.mxu2 %vm674_vm2, %v1394_v11  ;;  %v1324_v44 = vmul.f32 %v3077_v43, %v3473_v55  ;;  %v3517_v55 = vld [vmem:[%s3230_s21 + $0x18] sm:$0xff] }
 0x4c9   : > { %v1332_v46 = vpack.c.bf16 %v1324_v44, %v1324_v44 }
 0x4cb   : > { %v1420_v51 = vunpack.c.l.b16 %v1332_v46 }
 0x4cd   : > { %v3079_v45 = vpop.eup %3078 }
 0x4ce   : > { %v1325_v48 = vmul.f32 %v3079_v45, %v3063_v60 }
 0x4d0   : > { %v1333_v49 = vpack.c.bf16 %v1325_v48, %v1325_v48 }
 0x4d2   : > { %v1421_v52 = vunpack.c.l.b16 %v1333_v49 }
 0x4d4   : > { %v1422_v18 = vpack.c.b16 %v1421_v52, %v1420_v51 }
 0x4d6   : > { %2825 = vmatmul.msk.bf16.vlgmr.msra.gmra.mxu3 %vm674_vm2, %v1422_v18  ;;  %2844 = vmatmul.msk.bf16.vlgmr.msra.gmra.mxu1 %vm389_vm0, %v3496_v20 }
 0x4d7   : > { %2861 = vmatmul.msk.bf16.vlgmr.msra.gmra.mxu2 %vm389_vm0, %v3496_v20 }
 0x4e6   : > { %2845 = vmatmul.msk.bf16.gmra.mxu1 %vm389_vm0, %v3503_v53  ;;  %2878 = vmatmul.msk.bf16.vlgmr.msrb.gmra.mxu3 %vm389_vm0, %v3496_v20 }
 0x4e7   : > { %2862 = vmatmul.msk.bf16.gmra.mxu2 %vm389_vm0, %v3503_v53 }
 0x4f6   : > { %2846 = vmatmul.msk.bf16.gmra.mxu1 %vm389_vm0, %v3510_v54  ;;  %2879 = vmatmul.msk.bf16.gmra.mxu3 %vm389_vm0, %v3503_v53 }
 0x4f7   : > { %2863 = vmatmul.msk.bf16.gmra.mxu2 %vm389_vm0, %v3510_v54 }
 0x506   : > { %2847 = vmatmul.msk.bf16.gmra.mxu1 %vm389_vm0, %v3517_v55  ;;  %2880 = vmatmul.msk.bf16.gmra.mxu3 %vm389_vm0, %v3510_v54 }
 0x507   : > { %2864 = vmatmul.msk.bf16.gmra.mxu2 %vm389_vm0, %v3517_v55 }
 0x516   : > { %2881 = vmatmul.msk.bf16.gmra.mxu3 %vm389_vm0, %v3517_v55 }
 0x538   : > { %v1357_v60 = vpop.f32.mrf.mxu0 }
 0x540   : > { %v1359_v1 = vpop.f32.mrf.mxu0 }
 0x541   : > { %v1446_v2 = vpack.c.bf16 %v1359_v1, %v1357_v60 }
 0x543   : > { %v1385_v5 = vpop.f32.mrf.mxu1  ;;  %2827 = vmatmul.msk.bf16.vlgmr.msrb.gmra.mxu0 %vm563_vm1, %v1446_v2 }
 0x54a   : > { %v1413_v4 = vpop.f32.mrf.mxu2 }
 0x54b   : > { %v1387_v8 = vpop.f32.mrf.mxu1 }
 0x54c   : > { %v1447_v10 = vpack.c.bf16 %v1387_v8, %v1385_v5 }
 0x552   : > { %v1415_v3 = vpop.f32.mrf.mxu2 }
 0x553   : > { %2828 = vmatmul.msk.bf16.gmra.mxu0 %vm563_vm1, %v1447_v10  ;;  %v1535_v13 = vpop.f32.mrf.mxu1  ;;  %v1448_v21 = vpack.c.bf16 %v1415_v3, %v1413_v4 }
 0x554   : > { %v1536_v9 = vadd.f32 %v3010_v63, %v1535_v13 }
 0x556   : > { %v1657_v45 = vpack.c.bf16 %v1536_v9, %v1536_v9 }
 0x558   : > { %v1683_v57 = vunpack.c.l.b16 %v1657_v45 }
 0x559   : > { %v1441_v27 = vpop.f32.mrf.mxu3 }
 0x55a   : > { %v1586_v14 = vpop.f32.mrf.mxu2 }
 0x55b   : > { %v1537_v17 = vpop.f32.mrf.mxu1  ;;  %v1587_v19 = vadd.f32 %v3542_v15, %v1586_v14 }
 0x55c   : > { %v1538_v7 = vadd.f32 %v3010_v63, %v1537_v17 }
 0x55d   : > { %v1665_v23 = vpack.c.bf16 %v1587_v19, %v1587_v19 }
 0x55e   : > { %v1658_v46 = vpack.c.bf16 %v1538_v7, %v1538_v7 }
 0x55f   : > { %v1688_v12 = vunpack.c.l.b16 %v1665_v23 }
 0x560   : > { %v1684_v58 = vunpack.c.l.b16 %v1658_v46  ;;  %v3012_v46 = vld [vmem:[%s3809_s7 + $0x2] ss:$0 sm:$0xff] }
 0x561   : > { %v1443_v32 = vpop.f32.mrf.mxu3 }
 0x562   : > { %v1588_v22 = vpop.f32.mrf.mxu2  ;;  %v1449_v34 = vpack.c.bf16 %v1443_v32, %v1441_v27  ;;  %v1685_v2 = vpack.c.b16 %v1684_v58, %v1683_v57 }
 0x563   : > { %v1589_v25 = vadd.f32 %v3542_v15, %v1588_v22  ;;  %2829 = vmatmul.msk.bf16.gmra.mxu0 %vm563_vm1, %v1448_v21  ;;  %v1540_v26 = vpop.f32.mrf.mxu1 }
 0x564   : > { %v1541_v41 = vadd.f32 %v3010_v63, %v1540_v26 }
 0x565   : > { %v1666_v0 = vpack.c.bf16 %v1589_v25, %v1589_v25 }
 0x566   : > { %v1659_v48 = vpack.c.bf16 %v1541_v41, %v1541_v41 }
 0x567   : > { %v1689_v28 = vunpack.c.l.b16 %v1666_v0 }
 0x568   : > { %v1713_v60 = vunpack.c.l.b16 %v1659_v48 }
 0x569   : > { %v1690_v6 = vpack.c.b16 %v1689_v28, %v1688_v12  ;;  %v1637_v48 = vpop.f32.mrf.mxu3 }
 0x56a   : > { %v1591_v29 = vpop.f32.mrf.mxu2 }
 0x56b   : > { %v1695_v30 = vsel %vm563_vm1, %v1690_v6, 0  ;;  %v1542_v31 = vpop.f32.mrf.mxu1  ;;  %v1592_v33 = vadd.f32 %v3542_v15, %v1591_v29 }
 0x56c   : > { %1704 = vmatpush.bf16.xpose.msra.mxu0 %v1695_v30  ;;  %v1543_v11 = vadd.f32 %v3010_v63, %v1542_v31 }
 0x56d   : > { %v1667_v37 = vpack.c.bf16 %v1592_v33, %v1592_v33 }
 0x56e   : > { %v1660_v49 = vpack.c.bf16 %v1543_v11, %v1543_v11 }
 0x56f   : > { %v1718_v43 = vunpack.c.l.b16 %v1667_v37 }
 0x570   : > { %v1714_v61 = vunpack.c.l.b16 %v1660_v49 }
 0x572   : > { %v1593_v35 = vpop.f32.mrf.mxu2  ;;  %v1715_v5 = vpack.c.b16 %v1714_v61, %v1713_v60 }
 0x573   : > { %v1594_v38 = vadd.f32 %v3542_v15, %v1593_v35  ;;  %2830 = vmatmul.msk.bf16.gmra.mxu0 %vm563_vm1, %v1449_v34  ;;  %v1545_v39 = vpop.f32.mrf.mxu1 }
 0x574   : > { %v1546_v3 = vadd.f32 %v3010_v63, %v1545_v39 }
 0x575   : > { %v1668_v42 = vpack.c.bf16 %v1594_v38, %v1594_v38 }
 0x576   : > { %v1661_v22 = vpack.c.bf16 %v1546_v3, %v1546_v3 }
 0x577   : > { %v1719_v44 = vunpack.c.l.b16 %v1668_v42 }
 0x578   : > { %v1743_v0 = vunpack.c.l.b16 %v1661_v22 }
 0x579   : > { %v1720_v51 = vpack.c.b16 %v1719_v44, %v1718_v43 }
 0x57a   : > { %v1596_v52 = vpop.f32.mrf.mxu2 }
 0x57b   : > { %v1725_v18 = vsel %vm563_vm1, %v1720_v51, 0  ;;  %v1547_v62 = vpop.f32.mrf.mxu1  ;;  %v1597_v1 = vadd.f32 %v3542_v15, %v1596_v52  ;;  %v1638_v51 = vadd.f32 %v3012_v46, %v1637_v48 }
 0x57c   : > { %1734 = vmatpush.bf16.xpose.msrb.mxu1 %v1725_v18  ;;  %v1548_v13 = vadd.f32 %v3010_v63, %v1547_v62  ;;  %v1639_v18 = vpop.f32.mrf.mxu3 }
 0x57d   : > { %v1669_v8 = vpack.c.bf16 %v1597_v1, %v1597_v1  ;;  %v1673_v52 = vpack.c.bf16 %v1638_v51, %v1638_v51  ;;  %v1640_v58 = vadd.f32 %v3012_v46, %v1639_v18 }
 0x57e   : > { %v1662_v23 = vpack.c.bf16 %v1548_v13, %v1548_v13 }
 0x57f   : > { %v1748_v19 = vunpack.c.l.b16 %v1669_v8  ;;  %v1674_v62 = vpack.c.bf16 %v1640_v58, %v1640_v58 }
 0x580   : > { %v1744_v12 = vunpack.c.l.b16 %v1662_v23 }
 0x581   : > { %v1905_v1 = vunpack.c.l.b16 %v1674_v62 }
 0x582   : > { %v1598_v4 = vpop.f32.mrf.mxu2  ;;  %v1745_v29 = vpack.c.b16 %v1744_v12, %v1743_v0 }
 0x583   : > { %v1599_v10 = vadd.f32 %v3542_v15, %v1598_v4  ;;  %2883 = vmatmul.msk.bf16.vlgmr.msrb.gmra.mxu1 %vm563_vm1, %v1715_v5  ;;  %2882 = vmatmul.msk.bf16.vlgmr.msra.gmra.mxu0 %vm563_vm1, %v1685_v2  ;;  %v1550_v17 = vpop.f32.mrf.mxu1 }
 0x584   : > { %v1551_v32 = vadd.f32 %v3010_v63, %v1550_v17  ;;  %v1642_v5 = vpop.f32.mrf.mxu3 }
 0x585   : > { %v1670_v14 = vpack.c.bf16 %v1599_v10, %v1599_v10  ;;  %v1643_v8 = vadd.f32 %v3012_v46, %v1642_v5 }
 0x586   : > { %v1663_v38 = vpack.c.bf16 %v1551_v32, %v1551_v32 }
 0x587   : > { %v1749_v21 = vunpack.c.l.b16 %v1670_v14  ;;  %v1675_v10 = vpack.c.bf16 %v1643_v8, %v1643_v8 }
 0x588   : > { %v1773_v41 = vunpack.c.l.b16 %v1663_v38 }
 0x589   : > { %v1750_v25 = vpack.c.b16 %v1749_v21, %v1748_v19  ;;  %v1932_v19 = vunpack.c.l.b16 %v1675_v10 }
 0x58a   : > { %v1601_v26 = vpop.f32.mrf.mxu2 }
 0x58b   : > { %v1755_v27 = vsel %vm563_vm1, %v1750_v25, 0  ;;  %v1602_v28 = vadd.f32 %v3542_v15, %v1601_v26  ;;  %v1552_v6 = vpop.f32.mrf.mxu1 }
 0x58c   : > { %1764 = vmatpush.bf16.xpose.msrb.mxu2 %v1755_v27  ;;  %v1553_v34 = vadd.f32 %v3010_v63, %v1552_v6  ;;  %v1644_v3 = vpop.f32.mrf.mxu3 }
 0x58d   : > { %v1671_v30 = vpack.c.bf16 %v1602_v28, %v1602_v28  ;;  %v1645_v14 = vadd.f32 %v3012_v46, %v1644_v3 }
 0x58e   : > { %v1664_v39 = vpack.c.bf16 %v1553_v34, %v1553_v34 }
 0x58f   : > { %v1778_v35 = vunpack.c.l.b16 %v1671_v30  ;;  %v1676_v21 = vpack.c.bf16 %v1645_v14, %v1645_v14 }
 0x590   : > { %v1774_v11 = vunpack.c.l.b16 %v1664_v39 }
 0x591   : > { %v1933_v22 = vunpack.c.l.b16 %v1676_v21 }
 0x592   : > { %v1603_v31 = vpop.f32.mrf.mxu2  ;;  %v1775_v43 = vpack.c.b16 %v1774_v11, %v1773_v41 }
 0x593   : > { %v1604_v33 = vadd.f32 %v3542_v15, %v1603_v31  ;;  %2884 = vmatmul.msk.bf16.vlgmr.msrb.gmra.mxu2 %vm563_vm1, %v1745_v29  ;;  %v3008_v15 = vld [vmem:[%s3810_s8] ss:$0 sm:$0xff]  ;;  %v1934_v23 = vpack.c.b16 %v1933_v22, %v1932_v19 }
 0x594   : > { %v933_v63 = vadd.f32 %v3008_v15, %v3443_v16  ;;  %v935_v57 = vadd.f32 %v3008_v15, %v3447_v36  ;;  %v1904_v16 = vunpack.c.l.b16 %v1673_v52  ;;  %v937_v13 = vadd.f32 %v3008_v15, %v3451_v56  ;;  %v1647_v25 = vpop.f32.mrf.mxu3 }
 0x595   : > { %v1672_v37 = vpack.c.bf16 %v1604_v33, %v1604_v33  ;;  %1946 = vmatpush.bf16.msra.mxu1 %v1934_v23  ;;  %v1648_v27 = vadd.f32 %v3012_v46, %v1647_v25  ;;  %v939_v28 = vadd.f32 %v3008_v15, %v3455_v24 }
 0x596   : > { %v1906_v2 = vpack.c.b16 %v1905_v1, %v1904_v16 }
 0x597   : > { %v1779_v9 = vunpack.c.l.b16 %v1672_v37  ;;  %v1677_v0 = vpack.c.bf16 %v1648_v27, %v1648_v27 }
 0x598   : > { %1918 = vmatpush.bf16.msrb.mxu0 %v1906_v2 }
 0x599   : > { %v1780_v7 = vpack.c.b16 %v1779_v9, %v1778_v35  ;;  %v1960_v30 = vunpack.c.l.b16 %v1677_v0 }
 0x59b   : > { %v1785_v42 = vsel %vm563_vm1, %v1780_v7, 0 }
 0x59c   : > { %1794 = vmatpush.bf16.xpose.msra.mxu3 %v1785_v42  ;;  %v1649_v12 = vpop.f32.mrf.mxu3 }
 0x59d   : > { %v1650_v6 = vadd.f32 %v3012_v46, %v1649_v12 }
 0x59f   : > { %v1678_v31 = vpack.c.bf16 %v1650_v6, %v1650_v6 }
 0x5a1   : > { %v1961_v32 = vunpack.c.l.b16 %v1678_v31 }
 0x5a3   : > { %2885 = vmatmul.msk.bf16.vlgmr.msra.gmra.mxu3 %vm563_vm1, %v1775_v43  ;;  %v1962_v33 = vpack.c.b16 %v1961_v32, %v1960_v30 }
 0x5a4   : > { %v1652_v34 = vpop.f32.mrf.mxu3 }
 0x5a5   : > { %1974 = vmatpush.bf16.msra.mxu2 %v1962_v33  ;;  %v1653_v37 = vadd.f32 %v3012_v46, %v1652_v34 }
 0x5a7   : > { %v1679_v38 = vpack.c.bf16 %v1653_v37, %v1653_v37 }
 0x5a9   : > { %v1988_v42 = vunpack.c.l.b16 %v1679_v38 }
 0x5ac   : > { %v1654_v9 = vpop.f32.mrf.mxu3 }
 0x5ad   : > { %v1655_v39 = vadd.f32 %v3012_v46, %v1654_v9 }
 0x5af   : > { %v1680_v43 = vpack.c.bf16 %v1655_v39, %v1655_v39 }
 0x5b1   : > { %v1989_v15 = vunpack.c.l.b16 %v1680_v43 }
 0x5c0   : > { %v1476_v44 = vpop.f32.mrf.mxu0 }
 0x5c1   : > { %v3573_v45 = vadd.f32 %v1476_v44, %v933_v63  ;;  %v1990_v63 = vpack.c.b16 %v1989_v15, %v1988_v42 }
 0x5c3   : > { %2002 = vmatpush.bf16.msrb.mxu3 %v1990_v63 }
 0x5c8   : > { %v3578_v49 = vpop.f32.mrf.mxu0 }
 0x5d0   : > { %v1481_v60 = vpop.f32.mrf.mxu0 }
 0x5d1   : > { %v3581_v61 = vadd.f32 %v1481_v60, %v935_v57 }
 0x5d8   : > { %v3583_v4 = vpop.f32.mrf.mxu0 }
 0x5e0   : > { %v1486_v17 = vpop.f32.mrf.mxu0 }
 0x5e1   : > { %v3586_v36 = vadd.f32 %v1486_v17, %v937_v13 }
 0x5e8   : > { %v3588_v26 = vpop.f32.mrf.mxu0 }
 0x5f0   : > { %v1491_v29 = vpop.f32.mrf.mxu0 }
 0x5f1   : > { %v3591_v56 = vadd.f32 %v1491_v29, %v939_v28 }
 0x5f8   : > { %v3593_v35 = vpop.f32.mrf.mxu0 }
 0x600   : > { %v1736_v7 = vpop.f32.mrf.mxu1  ;;  %v1706_v41 = vpop.f32.mrf.mxu0 }
 0x601   : > { %v1807_v24 = vsel %vm674_vm2, %v1736_v7, -inf  ;;  %v1801_v11 = vsel %vm674_vm2, %v1706_v41, -inf }
 0x602   : > { %1808 = vmax.xlane.f32.xlu1 %v1807_v24  ;;  %1802 = vmax.xlane.f32.xlu2 %v1801_v11 }
 0x608   : > { %v1738_v44 = vpop.f32.mrf.mxu1  ;;  %v1708_v48 = vpop.f32.mrf.mxu0 }
 0x609   : > { %v1810_v51 = vsel %vm674_vm2, %v1738_v44, -inf  ;;  %v1804_v52 = vsel %vm674_vm2, %v1708_v48, -inf }
 0x60a   : > { %1811 = vmax.xlane.f32.xlu2 %v1810_v51  ;;  %1805 = vmax.xlane.f32.xlu0 %v1804_v52 }
 0x616   : > { %v1766_v46 = vpop.f32.mrf.mxu2 }
 0x617   : > { %v1813_v18 = vsel %vm674_vm2, %v1766_v46, -inf }
 0x618   : > { %1814 = vmax.xlane.f32.xlu0 %v1813_v18 }
 0x61e   : > { %v1768_v57 = vpop.f32.mrf.mxu2 }
 0x61f   : > { %v1816_v58 = vsel %vm674_vm2, %v1768_v57, -inf }
 0x620   : > { %1817 = vmax.xlane.f32.xlu1 %v1816_v58 }
 0x626   : > { %v1796_v60 = vpop.f32.mrf.mxu3 }
 0x627   : > { %v1819_v16 = vsel %vm674_vm2, %v1796_v60, -inf }
 0x628   : > { %1820 = vmax.xlane.f32.xlu2 %v1819_v16 }
 0x62e   : > { %v1798_v62 = vpop.f32.mrf.mxu3 }
 0x62f   : > { %v1822_v1 = vsel %vm674_vm2, %v1798_v62, -inf }
 0x630   : > { %1823 = vmax.xlane.f32.xlu0 %v1822_v1 }
 0x675   : > { %v1809_v2 = vpop.xlane.xlu1 %1808  ;;  %v1803_v5 = vpop.xlane.xlu2 %1802 }
 0x676   : > { %v1827_v8 = vsub.f32 %v1736_v7, %v1809_v2  ;;  %v1825_v10 = vsub.f32 %v1706_v41, %v1803_v5 }
 0x678   : > { %v1837_v3 = vmul.f32 1.442695, %v1827_v8  ;;  %v1833_v13 = vmul.f32 1.442695, %v1825_v10 }
 0x67a   : > { %3080 = vpow2.f32 %v1837_v3 }
 0x67b   : > { %3082 = vpow2.f32 %v1833_v13 }
 0x67d   : > { %v1812_v14 = vpop.xlane.xlu2 %1811  ;;  %v1806_v17 = vpop.xlane.xlu0 %1805 }
 0x67e   : > { %v1828_v19 = vsub.f32 %v1738_v44, %v1812_v14  ;;  %v1826_v21 = vsub.f32 %v1708_v48, %v1806_v17 }
 0x680   : > { %v3081_v22 = vpop.eup %3080  ;;  %v1839_v23 = vmul.f32 1.442695, %v1828_v19  ;;  %v1835_v25 = vmul.f32 1.442695, %v1826_v21 }
 0x681   : > { %v3083_v27 = vpop.eup %3082  ;;  %v1855_v0 = vsel %vm674_vm2, %v3081_v22, 0.0 }
 0x682   : > { %3084 = vpow2.f32 %v1839_v23  ;;  %1856 = vadd.xlane.f32.xlu0 %v1855_v0  ;;  %v1849_v12 = vsel %vm674_vm2, %v3083_v27, 0.0  ;;  %v2986_v23 = vld [vmem:[%s3804_s2 + $0x38] sm:$0xff] }
 0x683   : > { %3086 = vpow2.f32 %v1835_v25  ;;  %1850 = vadd.xlane.f32.xlu1 %v1849_v12  ;;  %2146 = vmatpush.bf16.msrb.mxu2 %v2986_v23 }
 0x688   : > { %v3085_v28 = vpop.eup %3084 }
 0x689   : > { %v3087_v6 = vpop.eup %3086  ;;  %v1858_v29 = vsel %vm674_vm2, %v3085_v28, 0.0 }
 0x68a   : > { %v1852_v30 = vsel %vm674_vm2, %v3087_v6, 0.0 }
 0x68b   : > { %v1815_v31 = vpop.xlane.xlu0 %1814  ;;  %1859 = vadd.xlane.f32.xlu1 %v1858_v29  ;;  %1853 = vadd.xlane.f32.xlu2 %v1852_v30  ;;  %v2983_v30 = vld [vmem:[%s3803_s1 + $0x30] sm:$0xff] }
 0x68c   : > { %v1829_v32 = vsub.f32 %v1766_v46, %v1815_v31 }
 0x68e   : > { %v1841_v33 = vmul.f32 1.442695, %v1829_v32 }
 0x690   : > { %3088 = vpow2.f32 %v1841_v33 }
 0x693   : > { %v1818_v34 = vpop.xlane.xlu1 %1817 }
 0x694   : > { %v1830_v37 = vsub.f32 %v1768_v57, %v1818_v34 }
 0x696   : > { %v3607_v38 = vpop.eup %3088  ;;  %v1843_v9 = vmul.f32 1.442695, %v1830_v37 }
 0x697   : > { %v1861_v39 = vsel %vm674_vm2, %v3607_v38, 0.0 }
 0x698   : > { %3090 = vpow2.f32 %v1843_v9  ;;  %1862 = vadd.xlane.f32.xlu2 %v1861_v39 }
 0x69b   : > { %v1821_v7 = vpop.xlane.xlu2 %1820 }
 0x69c   : > { %v1831_v41 = vsub.f32 %v1796_v60, %v1821_v7 }
 0x69e   : > { %v3091_v24 = vpop.eup %3090  ;;  %v1845_v11 = vmul.f32 1.442695, %v1831_v41 }
 0x69f   : > { %v1864_v42 = vsel %vm674_vm2, %v3091_v24, 0.0 }
 0x6a0   : > { %3092 = vpow2.f32 %v1845_v11  ;;  %1865 = vadd.xlane.f32.xlu0 %v1864_v42 }
 0x6a3   : > { %v1824_v43 = vpop.xlane.xlu0 %1823 }
 0x6a4   : > { %v1832_v15 = vsub.f32 %v1798_v62, %v1824_v43 }
 0x6a6   : > { %v3612_v63 = vpop.eup %3092  ;;  %v1847_v44 = vmul.f32 1.442695, %v1832_v15 }
 0x6a7   : > { %v1867_v48 = vsel %vm674_vm2, %v3612_v63, 0.0 }
 0x6a8   : > { %3094 = vpow2.f32 %v1847_v44  ;;  %1868 = vadd.xlane.f32.xlu1 %v1867_v48 }
 0x6ae   : > { %v3095_v51 = vpop.eup %3094 }
 0x6af   : > { %v1870_v52 = vsel %vm674_vm2, %v3095_v51, 0.0 }
 0x6b0   : > { %1871 = vadd.xlane.f32.xlu2 %v1870_v52 }
 0x6f5   : > { %v1857_v46 = vpop.xlane.xlu0 %1856 }
 0x6f6   : > { %v1851_v18 = vpop.xlane.xlu1 %1850  ;;  %3096 = vrcp.f32 %v1857_v46 }
 0x6f7   : > { %3098 = vrcp.f32 %v1851_v18 }
 0x6fc   : > { %v3097_v60 = vpop.eup %3096 }
 0x6fd   : > { %v3099_v16 = vpop.eup %3098  ;;  %v1883_v62 = vmul.f32 %v3097_v60, %v3081_v22  ;;  %v2987_v60 = vld [vmem:[%s3805_s3 + $0x30] sm:$0xff] }
 0x6fe   : > { %v1860_v57 = vpop.xlane.xlu1 %1859  ;;  %v1854_v58 = vpop.xlane.xlu2 %1853  ;;  %v1881_v1 = vmul.f32 %v3099_v16, %v3083_v27  ;;  %v2985_v27 = vld [vmem:[%s3804_s2 + $0x30] sm:$0xff] }
 0x6ff   : > { %3100 = vrcp.f32 %v1860_v57  ;;  %v1891_v8 = vpack.c.bf16 %v1883_v62, %v1883_v62  ;;  %2147 = vmatpush.bf16.msrb.mxu2 %v2985_v27 }
 0x700   : > { %3102 = vrcp.f32 %v1854_v58  ;;  %v1889_v3 = vpack.c.bf16 %v1881_v1, %v1881_v1  ;;  %v2988_v58 = vld [vmem:[%s3805_s3 + $0x38] sm:$0xff] }
 0x701   : > { %v1927_v19 = vunpack.c.l.b16 %v1891_v8  ;;  %2197 = vmatpush.bf16.msra.mxu3 %v2988_v58 }
 0x702   : > { %v1899_v25 = vunpack.c.l.b16 %v1889_v3 }
 0x705   : > { %v3101_v2 = vpop.eup %3100  ;;  %2198 = vmatpush.bf16.msra.mxu3 %v2987_v60 }
 0x706   : > { %v3103_v5 = vpop.eup %3102  ;;  %v1884_v10 = vmul.f32 %v3101_v2, %v3085_v28  ;;  %v2984_v28 = vld [vmem:[%s3803_s1 + $0x38] sm:$0xff] }
 0x707   : > { %v1882_v13 = vmul.f32 %v3103_v5, %v3087_v6  ;;  %2095 = vmatpush.bf16.msrb.mxu1 %v2984_v28  ;;  %v3680_v28 = vld [vmem:[%s3807_s5 + $0x3] ss:$0 sm:$0xff] }
 0x708   : > { %v1892_v14 = vpack.c.bf16 %v1884_v10, %v1884_v10 }
 0x709   : > { %v1890_v17 = vpack.c.bf16 %v1882_v13, %v1882_v13 }
 0x70a   : > { %v1928_v21 = vunpack.c.l.b16 %v1892_v14 }
 0x70b   : > { %v1900_v0 = vunpack.c.l.b16 %v1890_v17  ;;  %v1863_v12 = vpop.xlane.xlu2 %1862  ;;  %2096 = vmatpush.bf16.msrb.mxu1 %v2983_v30 }
 0x70c   : > { %v1929_v29 = vpack.c.b16 %v1928_v21, %v1927_v19  ;;  %3104 = vrcp.f32 %v1863_v12  ;;  %v3670_v19 = vld [vmem:[%s3808_s6 + $0x3] ss:$0 sm:$0xff] }
 0x70d   : > { %v1901_v22 = vpack.c.b16 %v1900_v0, %v1899_v25 }
 0x70e   : > { %2887 = vmatmul.msk.bf16.vlgmr.msra.gmra.mxu1 %vm674_vm2, %v1929_v29 }
 0x70f   : > { %2886 = vmatmul.msk.bf16.vlgmr.msrb.gmra.mxu0 %vm674_vm2, %v1901_v22 }
 0x712   : > { %v3105_v31 = vpop.eup %3104 }
 0x713   : > { %v1866_v6 = vpop.xlane.xlu0 %1865  ;;  %v1885_v32 = vmul.f32 %v3105_v31, %v3607_v38 }
 0x714   : > { %3106 = vrcp.f32 %v1866_v6 }
 0x715   : > { %v1893_v34 = vpack.c.bf16 %v1885_v32, %v1885_v32 }
 0x717   : > { %v1955_v7 = vunpack.c.l.b16 %v1893_v34 }
 0x71a   : > { %v3107_v33 = vpop.eup %3106 }
 0x71b   : > { %v1886_v37 = vmul.f32 %v3107_v33, %v3091_v24  ;;  %v1869_v9 = vpop.xlane.xlu1 %1868 }
 0x71c   : > { %3108 = vrcp.f32 %v1869_v9 }
 0x71d   : > { %v1894_v39 = vpack.c.bf16 %v1886_v37, %v1886_v37 }
 0x71e   : > { %2908 = vmatmul.msk.bf16.vlgmr.msrb.gmra.mxu1 %vm389_vm0, %v3496_v20 }
 0x71f   : > { %v1956_v41 = vunpack.c.l.b16 %v1894_v39 }
 0x721   : > { %v1957_v11 = vpack.c.b16 %v1956_v41, %v1955_v7 }
 0x722   : > { %v3109_v43 = vpop.eup %3108 }
 0x723   : > { %v1872_v42 = vpop.xlane.xlu2 %1871  ;;  %2888 = vmatmul.msk.bf16.vlgmr.msra.gmra.mxu2 %vm674_vm2, %v1957_v11  ;;  %v1887_v15 = vmul.f32 %v3109_v43, %v3612_v63  ;;  %v2890_v63 = vld [vmem:[%s3806_s4 + $0x8] sm:$0xf] }
 0x724   : > { %3110 = vrcp.f32 %v1872_v42 }
 0x725   : > { %v1895_v44 = vpack.c.bf16 %v1887_v15, %v1887_v15 }
 0x727   : > { %v1983_v52 = vunpack.c.l.b16 %v1895_v44 }
 0x72a   : > { %v3111_v38 = vpop.eup %3110 }
 0x72b   : > { %v1888_v48 = vmul.f32 %v3111_v38, %v3095_v51  ;;  %v2028_v51 = vsel %vm900_vm3, %v2890_v63, 0 }
 0x72c   : > { %2037 = vmatpush.bf16.msra.mxu0 %v2028_v51 }
 0x72d   : > { %v1896_v24 = vpack.c.bf16 %v1888_v48, %v1888_v48 }
 0x72e   : > { %2909 = vmatmul.msk.bf16.gmra.mxu1 %vm389_vm0, %v3503_v53 }
 0x72f   : > { %v1984_v46 = vunpack.c.l.b16 %v1896_v24 }
 0x731   : > { %v1985_v18 = vpack.c.b16 %v1984_v46, %v1983_v52 }
 0x733   : > { %2889 = vmatmul.msk.bf16.vlgmr.msrb.gmra.mxu3 %vm674_vm2, %v1985_v18  ;;  %2925 = vmatmul.msk.bf16.vlgmr.msrb.gmra.mxu2 %vm389_vm0, %v3496_v20 }
 0x73e   : > { %2910 = vmatmul.msk.bf16.gmra.mxu1 %vm389_vm0, %v3510_v54 }
 0x743   : > { %2926 = vmatmul.msk.bf16.gmra.mxu2 %vm389_vm0, %v3503_v53  ;;  %2942 = vmatmul.msk.bf16.vlgmr.msra.gmra.mxu3 %vm389_vm0, %v3496_v20 }
 0x74e   : > { %2911 = vmatmul.msk.bf16.gmra.mxu1 %vm389_vm0, %v3517_v55 }
 0x753   : > { %2927 = vmatmul.msk.bf16.gmra.mxu2 %vm389_vm0, %v3510_v54  ;;  %2943 = vmatmul.msk.bf16.gmra.mxu3 %vm389_vm0, %v3503_v53 }
 0x763   : > { %2928 = vmatmul.msk.bf16.gmra.mxu2 %vm389_vm0, %v3517_v55  ;;  %2944 = vmatmul.msk.bf16.gmra.mxu3 %vm389_vm0, %v3510_v54 }
 0x773   : > { %2945 = vmatmul.msk.bf16.gmra.mxu3 %vm389_vm0, %v3517_v55 }
 0x78b   : > { %v1948_v1 = vpop.f32.mrf.mxu1 }
 0x78c   : > { %v1920_v57 = vpop.f32.mrf.mxu0 }
 0x793   : > { %v1950_v2 = vpop.f32.mrf.mxu1 }
 0x794   : > { %v1922_v16 = vpop.f32.mrf.mxu0  ;;  %v2010_v5 = vpack.c.bf16 %v1950_v2, %v1948_v1 }
 0x795   : > { %v2009_v62 = vpack.c.bf16 %v1922_v16, %v1920_v57 }
 0x797   : > { %2891 = vmatmul.msk.bf16.vlgmr.msra.gmra.mxu0 %vm563_vm1, %v2009_v62 }
 0x79b   : > { %v2098_v10 = vpop.f32.mrf.mxu1 }
 0x79c   : > { %v2099_v33 = vadd.f32 %v3680_v28, %v2098_v10 }
 0x79e   : > { %v2220_v9 = vpack.c.bf16 %v2099_v33, %v2099_v33 }
 0x7a0   : > { %v2246_v42 = vunpack.c.l.b16 %v2220_v9 }
 0x7a3   : > { %v2100_v13 = vpop.f32.mrf.mxu1 }
 0x7a4   : > { %v2101_v34 = vadd.f32 %v3680_v28, %v2100_v13 }
 0x7a6   : > { %v1976_v8 = vpop.f32.mrf.mxu2  ;;  %v2221_v39 = vpack.c.bf16 %v2101_v34, %v2101_v34 }
 0x7a7   : > { %2892 = vmatmul.msk.bf16.gmra.mxu0 %vm563_vm1, %v2010_v5 }
 0x7a8   : > { %v2247_v15 = vunpack.c.l.b16 %v2221_v39 }
 0x7aa   : > { %v2248_v52 = vpack.c.b16 %v2247_v15, %v2246_v42 }
 0x7ab   : > { %v2103_v23 = vpop.f32.mrf.mxu1 }
 0x7ac   : > { %v2104_v38 = vadd.f32 %v3680_v28, %v2103_v23 }
 0x7ae   : > { %v1978_v3 = vpop.f32.mrf.mxu2  ;;  %v2222_v46 = vpack.c.bf16 %v2104_v38, %v2104_v38 }
 0x7af   : > { %v2011_v14 = vpack.c.bf16 %v1978_v3, %v1976_v8 }
 0x7b0   : > { %v2276_v58 = vunpack.c.l.b16 %v2222_v46 }
 0x7b3   : > { %v2105_v31 = vpop.f32.mrf.mxu1 }
 0x7b4   : > { %v2106_v55 = vadd.f32 %v3680_v28, %v2105_v31 }
 0x7b6   : > { %v2149_v17 = vpop.f32.mrf.mxu2  ;;  %v2004_v20 = vpop.f32.mrf.mxu3  ;;  %v2223_v63 = vpack.c.bf16 %v2106_v55, %v2106_v55 }
 0x7b7   : > { %2893 = vmatmul.msk.bf16.gmra.mxu0 %vm563_vm1, %v2011_v14  ;;  %v2150_v21 = vadd.f32 %v3670_v19, %v2149_v17 }
 0x7b8   : > { %v2277_v60 = vunpack.c.l.b16 %v2223_v63 }
 0x7b9   : > { %v2228_v25 = vpack.c.bf16 %v2150_v21, %v2150_v21 }
 0x7ba   : > { %v2278_v1 = vpack.c.b16 %v2277_v60, %v2276_v58 }
 0x7bb   : > { %v2251_v22 = vunpack.c.l.b16 %v2228_v25  ;;  %v2108_v43 = vpop.f32.mrf.mxu1 }
 0x7bc   : > { %v2109_v10 = vadd.f32 %v3680_v28, %v2108_v43 }
 0x7be   : > { %v2151_v53 = vpop.f32.mrf.mxu2  ;;  %v2006_v29 = vpop.f32.mrf.mxu3  ;;  %v2224_v21 = vpack.c.bf16 %v2109_v10, %v2109_v10 }
 0x7bf   : > { %v2152_v0 = vadd.f32 %v3670_v19, %v2151_v53  ;;  %v2012_v6 = vpack.c.bf16 %v2006_v29, %v2004_v20 }
 0x7c1   : > { %v2229_v12 = vpack.c.bf16 %v2152_v0, %v2152_v0 }
 0x7c3   : > { %v2252_v27 = vunpack.c.l.b16 %v2229_v12  ;;  %v2110_v16 = vpop.f32.mrf.mxu1  ;;  %v2306_v12 = vunpack.c.l.b16 %v2224_v21 }
 0x7c4   : > { %v2111_v13 = vadd.f32 %v3680_v28, %v2110_v16 }
 0x7c5   : > { %v2253_v30 = vpack.c.b16 %v2252_v27, %v2251_v22 }
 0x7c6   : > { %v2154_v54 = vpop.f32.mrf.mxu2  ;;  %v2225_v53 = vpack.c.bf16 %v2111_v13, %v2111_v13 }
 0x7c7   : > { %2894 = vmatmul.msk.bf16.gmra.mxu0 %vm563_vm1, %v2012_v6  ;;  %v2258_v32 = vsel %vm563_vm1, %v2253_v30, 0  ;;  %v2155_v37 = vadd.f32 %v3670_v19, %v2154_v54 }
 0x7c8   : > { %2267 = vmatpush.bf16.xpose.msrb.mxu0 %v2258_v32  ;;  %v2307_v29 = vunpack.c.l.b16 %v2225_v53 }
 0x7c9   : > { %v2230_v41 = vpack.c.bf16 %v2155_v37, %v2155_v37 }
 0x7ca   : > { %v2308_v27 = vpack.c.b16 %v2307_v29, %v2306_v12 }
 0x7cb   : > { %v2281_v48 = vunpack.c.l.b16 %v2230_v41  ;;  %v2113_v20 = vpop.f32.mrf.mxu1 }
 0x7cc   : > { %v2114_v32 = vadd.f32 %v3680_v28, %v2113_v20 }
 0x7ce   : > { %v2156_v7 = vpop.f32.mrf.mxu2  ;;  %v2226_v39 = vpack.c.bf16 %v2114_v32, %v2114_v32 }
 0x7cf   : > { %v2157_v11 = vadd.f32 %v3670_v19, %v2156_v7 }
 0x7d0   : > { %v2336_v42 = vunpack.c.l.b16 %v2226_v39 }
 0x7d1   : > { %v2231_v44 = vpack.c.bf16 %v2157_v11, %v2157_v11 }
 0x7d3   : > { %v2282_v24 = vunpack.c.l.b16 %v2231_v44  ;;  %v2115_v30 = vpop.f32.mrf.mxu1  ;;  %v2200_v44 = vpop.f32.mrf.mxu3 }
 0x7d4   : > { %v2116_v34 = vadd.f32 %v3680_v28, %v2115_v30  ;;  %v3015_v28 = vld [vmem:[%s3809_s7 + $0x3] ss:$0 sm:$0xff] }
 0x7d5   : > { %v2283_v18 = vpack.c.b16 %v2282_v24, %v2281_v48  ;;  %v2201_v48 = vadd.f32 %v3015_v28, %v2200_v44 }
 0x7d6   : > { %v2159_v51 = vpop.f32.mrf.mxu2  ;;  %v2227_v41 = vpack.c.bf16 %v2116_v34, %v2116_v34 }
 0x7d7   : > { %2946 = vmatmul.msk.bf16.vlgmr.msrb.gmra.mxu0 %vm563_vm1, %v2248_v52  ;;  %v2288_v57 = vsel %vm563_vm1, %v2283_v18, 0  ;;  %v2160_v62 = vadd.f32 %v3670_v19, %v2159_v51  ;;  %v2236_v24 = vpack.c.bf16 %v2201_v48, %v2201_v48 }
 0x7d8   : > { %2297 = vmatpush.bf16.xpose.msra.mxu1 %v2288_v57  ;;  %v2337_v43 = vunpack.c.l.b16 %v2227_v41 }
 0x7d9   : > { %v2232_v5 = vpack.c.bf16 %v2160_v62, %v2160_v62  ;;  %v2467_v51 = vunpack.c.l.b16 %v2236_v24 }
 0x7da   : > { %v2338_v15 = vpack.c.b16 %v2337_v43, %v2336_v42 }
 0x7db   : > { %v2311_v14 = vunpack.c.l.b16 %v2232_v5  ;;  %v2202_v52 = vpop.f32.mrf.mxu3 }
 0x7dc   : > { %v2203_v46 = vadd.f32 %v3015_v28, %v2202_v52 }
 0x7de   : > { %v2161_v2 = vpop.f32.mrf.mxu2  ;;  %v2237_v57 = vpack.c.bf16 %v2203_v46, %v2203_v46 }
 0x7df   : > { %v2162_v8 = vadd.f32 %v3670_v19, %v2161_v2  ;;  %2947 = vmatmul.msk.bf16.vlgmr.msra.gmra.mxu1 %vm563_vm1, %v2278_v1 }
 0x7e0   : > { %v2468_v58 = vunpack.c.l.b16 %v2237_v57 }
 0x7e1   : > { %v2233_v3 = vpack.c.bf16 %v2162_v8, %v2162_v8 }
 0x7e3   : > { %v2312_v17 = vunpack.c.l.b16 %v2233_v3  ;;  %v2205_v60 = vpop.f32.mrf.mxu3 }
 0x7e4   : > { %v2206_v62 = vadd.f32 %v3015_v28, %v2205_v60 }
 0x7e5   : > { %v2313_v23 = vpack.c.b16 %v2312_v17, %v2311_v14 }
 0x7e6   : > { %v2164_v25 = vpop.f32.mrf.mxu2  ;;  %v2238_v1 = vpack.c.bf16 %v2206_v62, %v2206_v62 }
 0x7e7   : > { %v2318_v0 = vsel %vm563_vm1, %v2313_v23, 0  ;;  %v2165_v22 = vadd.f32 %v3670_v19, %v2164_v25 }
 0x7e8   : > { %2327 = vmatpush.bf16.xpose.msra.mxu2 %v2318_v0  ;;  %v2495_v3 = vunpack.c.l.b16 %v2238_v1 }
 0x7e9   : > { %v2234_v54 = vpack.c.bf16 %v2165_v22, %v2165_v22 }
 0x7eb   : > { %v2341_v37 = vunpack.c.l.b16 %v2234_v54  ;;  %v2207_v2 = vpop.f32.mrf.mxu3 }
 0x7ec   : > { %v2208_v5 = vadd.f32 %v3015_v28, %v2207_v2 }
 0x7ee   : > { %v2166_v6 = vpop.f32.mrf.mxu2  ;;  %v2239_v13 = vpack.c.bf16 %v2208_v5, %v2208_v5 }
 0x7ef   : > { %v2167_v31 = vadd.f32 %v3670_v19, %v2166_v6  ;;  %2948 = vmatmul.msk.bf16.vlgmr.msra.gmra.mxu2 %vm563_vm1, %v2308_v27 }
 0x7f1   : > { %v2235_v33 = vpack.c.bf16 %v2167_v31, %v2167_v31 }
 0x7f3   : > { %v2342_v9 = vunpack.c.l.b16 %v2235_v33  ;;  %v2210_v17 = vpop.f32.mrf.mxu3 }
 0x7f4   : > { %v2211_v21 = vadd.f32 %v3015_v28, %v2210_v17 }
 0x7f5   : > { %v2343_v7 = vpack.c.b16 %v2342_v9, %v2341_v37 }
 0x7f6   : > { %v2240_v23 = vpack.c.bf16 %v2211_v21, %v2211_v21 }
 0x7f7   : > { %v2348_v11 = vsel %vm563_vm1, %v2343_v7, 0 }
 0x7f8   : > { %2357 = vmatpush.bf16.xpose.msrb.mxu3 %v2348_v11  ;;  %v2523_v29 = vunpack.c.l.b16 %v2240_v23 }
 0x7fb   : > { %v2212_v53 = vpop.f32.mrf.mxu3 }
 0x7fc   : > { %v2213_v25 = vadd.f32 %v3015_v28, %v2212_v53 }
 0x7fe   : > { %v2241_v22 = vpack.c.bf16 %v2213_v25, %v2213_v25 }
 0x7ff   : > { %2949 = vmatmul.msk.bf16.vlgmr.msrb.gmra.mxu3 %vm563_vm1, %v2338_v15 }
 0x803   : > { %v2215_v6 = vpop.f32.mrf.mxu3 }
 0x804   : > { %v2216_v54 = vadd.f32 %v3015_v28, %v2215_v6 }
 0x806   : > { %v2242_v31 = vpack.c.bf16 %v2216_v54, %v2216_v54 }
 0x808   : > { %v2551_v9 = vunpack.c.l.b16 %v2242_v31 }
 0x80b   : > { %v2217_v32 = vpop.f32.mrf.mxu3 }
 0x80c   : > { %v2218_v33 = vadd.f32 %v3015_v28, %v2217_v32 }
 0x80e   : > { %v2243_v39 = vpack.c.bf16 %v2218_v33, %v2218_v33 }
 0x814   : > { %v2039_v19 = vpop.f32.mrf.mxu0 }
 0x815   : > { %v3708_v38 = vadd.f32 %v2039_v19, %v3573_v45  ;;  %v2469_v45 = vpack.c.b16 %v2468_v58, %v2467_v51 }
 0x817   : > { %2481 = vmatpush.bf16.msra.mxu0 %v2469_v45 }
 0x81c   : > { %v3710_v55 = vpop.f32.mrf.mxu0 }
 0x824   : > { %v2044_v18 = vpop.f32.mrf.mxu0 }
 0x825   : > { %v3716_v63 = vadd.f32 %v2044_v18, %v3581_v61  ;;  %v2496_v61 = vunpack.c.l.b16 %v2239_v13 }
 0x827   : > { %v2497_v14 = vpack.c.b16 %v2496_v61, %v2495_v3 }
 0x829   : > { %2509 = vmatpush.bf16.msrb.mxu1 %v2497_v14 }
 0x82c   : > { %v3718_v16 = vpop.f32.mrf.mxu0 }
 0x834   : > { %v2049_v8 = vpop.f32.mrf.mxu0 }
 0x835   : > { %v3721_v10 = vadd.f32 %v2049_v8, %v3586_v36  ;;  %v2524_v36 = vunpack.c.l.b16 %v2241_v22 }
 0x837   : > { %v2525_v27 = vpack.c.b16 %v2524_v36, %v2523_v29 }
 0x839   : > { %2537 = vmatpush.bf16.msrb.mxu2 %v2525_v27 }
 0x83c   : > { %v3723_v20 = vpop.f32.mrf.mxu0 }
 0x844   : > { %v2054_v0 = vpop.f32.mrf.mxu0 }
 0x845   : > { %v3726_v12 = vadd.f32 %v2054_v0, %v3591_v56  ;;  %v2552_v56 = vunpack.c.l.b16 %v2243_v39 }
 0x847   : > { %v2553_v7 = vpack.c.b16 %v2552_v56, %v2551_v9 }
 0x849   : > { %2565 = vmatpush.bf16.msra.mxu3 %v2553_v7 }
 0x84c   : > { %v3728_v30 = vpop.f32.mrf.mxu0 }
 0x854   : > { %v2269_v34 = vpop.f32.mrf.mxu0 }
 0x855   : > { %v2364_v37 = vsel %vm674_vm2, %v2269_v34, -inf }
 0x856   : > { %2365 = vmax.xlane.f32.xlu0 %v2364_v37 }
 0x85c   : > { %v2271_v41 = vpop.f32.mrf.mxu0  ;;  %v2299_v11 = vpop.f32.mrf.mxu1 }
 0x85d   : > { %v2370_v42 = vsel %vm674_vm2, %v2299_v11, -inf  ;;  %v2367_v43 = vsel %vm674_vm2, %v2271_v41, -inf }
 0x85e   : > { %2371 = vmax.xlane.f32.xlu2 %v2370_v42  ;;  %2368 = vmax.xlane.f32.xlu1 %v2367_v43 }
 0x864   : > { %v2301_v15 = vpop.f32.mrf.mxu1 }
 0x865   : > { %v2373_v19 = vsel %vm674_vm2, %v2301_v15, -inf }
 0x866   : > { %2374 = vmax.xlane.f32.xlu0 %v2373_v19 }
 0x872   : > { %v2329_v44 = vpop.f32.mrf.mxu2 }
 0x873   : > { %v2376_v28 = vsel %vm674_vm2, %v2329_v44, -inf }
 0x874   : > { %2377 = vmax.xlane.f32.xlu1 %v2376_v28 }
 0x87a   : > { %v2331_v48 = vpop.f32.mrf.mxu2 }
 0x87b   : > { %v2379_v24 = vsel %vm674_vm2, %v2331_v48, -inf }
 0x87c   : > { %2380 = vmax.xlane.f32.xlu2 %v2379_v24 }
 0x882   : > { %v2359_v52 = vpop.f32.mrf.mxu3 }
 0x883   : > { %v2382_v46 = vsel %vm674_vm2, %v2359_v52, -inf }
 0x884   : > { %2383 = vmax.xlane.f32.xlu0 %v2382_v46 }
 0x88a   : > { %v2361_v18 = vpop.f32.mrf.mxu3 }
 0x88b   : > { %v2385_v51 = vsel %vm674_vm2, %v2361_v18, -inf }
 0x88c   : > { %2386 = vmax.xlane.f32.xlu1 %v2385_v51 }
 0x8c9   : > { %v2366_v57 = vpop.xlane.xlu0 %2365 }
 0x8ca   : > { %v2388_v58 = vsub.f32 %v2269_v34, %v2366_v57 }
 0x8cc   : > { %v2396_v45 = vmul.f32 1.442695, %v2388_v58 }
 0x8ce   : > { %3112 = vpow2.f32 %v2396_v45 }
 0x8d1   : > { %v2372_v60 = vpop.xlane.xlu2 %2371  ;;  %v2369_v62 = vpop.xlane.xlu1 %2368 }
 0x8d2   : > { %v2390_v1 = vsub.f32 %v2299_v11, %v2372_v60  ;;  %v2389_v2 = vsub.f32 %v2271_v41, %v2369_v62 }
 0x8d4   : > { %v3113_v5 = vpop.eup %3112  ;;  %v2400_v8 = vmul.f32 1.442695, %v2390_v1  ;;  %v2398_v3 = vmul.f32 1.442695, %v2389_v2 }
 0x8d5   : > { %v2412_v13 = vsel %vm674_vm2, %v3113_v5, 0.0 }
 0x8d6   : > { %3114 = vpow2.f32 %v2400_v8  ;;  %2413 = vadd.xlane.f32.xlu2 %v2412_v13 }
 0x8d7   : > { %3116 = vpow2.f32 %v2398_v3 }
 0x8d9   : > { %v2375_v61 = vpop.xlane.xlu0 %2374 }
 0x8da   : > { %v2391_v14 = vsub.f32 %v2301_v15, %v2375_v61 }
 0x8dc   : > { %v3115_v17 = vpop.eup %3114  ;;  %v2402_v21 = vmul.f32 1.442695, %v2391_v14 }
 0x8dd   : > { %v3117_v23 = vpop.eup %3116  ;;  %v2418_v53 = vsel %vm674_vm2, %v3115_v17, 0.0 }
 0x8de   : > { %3118 = vpow2.f32 %v2402_v21  ;;  %2419 = vadd.xlane.f32.xlu1 %v2418_v53  ;;  %v2415_v25 = vsel %vm674_vm2, %v3117_v23, 0.0 }
 0x8df   : > { %2416 = vadd.xlane.f32.xlu0 %v2415_v25 }
 0x8e4   : > { %v3119_v0 = vpop.eup %3118 }
 0x8e5   : > { %v2421_v29 = vsel %vm674_vm2, %v3119_v0, 0.0 }
 0x8e6   : > { %2422 = vadd.xlane.f32.xlu2 %v2421_v29 }
 0x8e7   : > { %v2378_v22 = vpop.xlane.xlu1 %2377 }
 0x8e8   : > { %v2392_v36 = vsub.f32 %v2329_v44, %v2378_v22 }
 0x8ea   : > { %v2404_v27 = vmul.f32 1.442695, %v2392_v36 }
 0x8ec   : > { %3120 = vpow2.f32 %v2404_v27 }
 0x8ef   : > { %v2381_v6 = vpop.xlane.xlu2 %2380 }
 0x8f0   : > { %v2393_v54 = vsub.f32 %v2331_v48, %v2381_v6 }
 0x8f2   : > { %v3121_v31 = vpop.eup %3120  ;;  %v2406_v32 = vmul.f32 1.442695, %v2393_v54 }
 0x8f3   : > { %v2424_v33 = vsel %vm674_vm2, %v3121_v31, 0.0 }
 0x8f4   : > { %3122 = vpow2.f32 %v2406_v32  ;;  %2425 = vadd.xlane.f32.xlu0 %v2424_v33 }
 0x8f7   : > { %v2384_v34 = vpop.xlane.xlu0 %2383 }
 0x8f8   : > { %v2394_v37 = vsub.f32 %v2359_v52, %v2384_v34 }
 0x8fa   : > { %v3123_v9 = vpop.eup %3122  ;;  %v2408_v39 = vmul.f32 1.442695, %v2394_v37 }
 0x8fb   : > { %v2427_v56 = vsel %vm674_vm2, %v3123_v9, 0.0 }
 0x8fc   : > { %3124 = vpow2.f32 %v2408_v39  ;;  %2428 = vadd.xlane.f32.xlu1 %v2427_v56 }
 0x8ff   : > { %v2387_v7 = vpop.xlane.xlu1 %2386 }
 0x900   : > { %v2395_v41 = vsub.f32 %v2361_v18, %v2387_v7 }
 0x902   : > { %v3125_v11 = vpop.eup %3124  ;;  %v2410_v42 = vmul.f32 1.442695, %v2395_v41 }
 0x903   : > { %v2430_v43 = vsel %vm674_vm2, %v3125_v11, 0.0 }
 0x904   : > { %3126 = vpow2.f32 %v2410_v42  ;;  %2431 = vadd.xlane.f32.xlu2 %v2430_v43 }
 0x90a   : > { %v3127_v15 = vpop.eup %3126 }
 0x90b   : > { %v2433_v19 = vsel %vm674_vm2, %v3127_v15, 0.0 }
 0x90c   : > { %2434 = vadd.xlane.f32.xlu0 %v2433_v19 }
 0x949   : > { %v2414_v44 = vpop.xlane.xlu2 %2413 }
 0x94a   : > { %3128 = vrcp.f32 %v2414_v44 }
 0x950   : > { %v3129_v24 = vpop.eup %3128 }
 0x951   : > { %v2420_v28 = vpop.xlane.xlu1 %2419  ;;  %v2444_v52 = vmul.f32 %v3129_v24, %v3113_v5 }
 0x952   : > { %v2417_v48 = vpop.xlane.xlu0 %2416 }
 0x953   : > { %3130 = vrcp.f32 %v2417_v48  ;;  %v2452_v57 = vpack.c.bf16 %v2444_v52, %v2444_v52 }
 0x954   : > { %3132 = vrcp.f32 %v2420_v28 }
 0x955   : > { %v2462_v62 = vunpack.c.l.b16 %v2452_v57 }
 0x959   : > { %v3131_v46 = vpop.eup %3130  ;;  %v2423_v18 = vpop.xlane.xlu2 %2422 }
 0x95a   : > { %v3133_v51 = vpop.eup %3132  ;;  %v2445_v58 = vmul.f32 %v3131_v46, %v3117_v23  ;;  %3134 = vrcp.f32 %v2423_v18 }
 0x95b   : > { %v2446_v60 = vmul.f32 %v3133_v51, %v3115_v17 }
 0x95c   : > { %v2453_v45 = vpack.c.bf16 %v2445_v58, %v2445_v58 }
 0x95d   : > { %v2454_v3 = vpack.c.bf16 %v2446_v60, %v2446_v60 }
 0x95e   : > { %v2463_v1 = vunpack.c.l.b16 %v2453_v45 }
 0x95f   : > { %v2490_v14 = vunpack.c.l.b16 %v2454_v3 }
 0x960   : > { %v3135_v2 = vpop.eup %3134  ;;  %v2464_v8 = vpack.c.b16 %v2463_v1, %v2462_v62  ;;  %v3148_v62 = vld [vmem:[%s3810_s8] ss:$0 sm:$0xff] }
 0x961   : > { %v2447_v13 = vmul.f32 %v3135_v2, %v3119_v0  ;;  %v934_v1 = vadd.f32 %v3148_v62, %v3445_v47 }
 0x962   : > { %2950 = vmatmul.msk.bf16.vlgmr.msra.gmra.mxu0 %vm674_vm2, %v2464_v8 }
 0x963   : > { %v2455_v61 = vpack.c.bf16 %v2447_v13, %v2447_v13  ;;  %v1497_v2 = vadd.f32 %v3578_v49, %v934_v1 }
 0x965   : > { %v2491_v21 = vunpack.c.l.b16 %v2455_v61  ;;  %v2060_v8 = vadd.f32 %v3710_v55, %v1497_v2 }
 0x967   : > { %v2492_v5 = vpack.c.b16 %v2491_v21, %v2490_v14  ;;  %v2426_v53 = vpop.xlane.xlu0 %2425  ;;  %v936_v14 = vadd.f32 %v3148_v62, %v3449_v40 }
 0x968   : > { %3136 = vrcp.f32 %v2426_v53 }
 0x969   : > { %2951 = vmatmul.msk.bf16.vlgmr.msrb.gmra.mxu1 %vm674_vm2, %v2492_v5  ;;  %v1499_v47 = vadd.f32 %v3583_v4, %v936_v14 }
 0x96b   : > { %v2062_v21 = vadd.f32 %v3718_v16, %v1499_v47 }
 0x96e   : > { %v3137_v25 = vpop.eup %3136 }
 0x96f   : > { %v2429_v23 = vpop.xlane.xlu1 %2428  ;;  %v2448_v17 = vmul.f32 %v3137_v25, %v3121_v31 }
 0x970   : > { %3138 = vrcp.f32 %v2429_v23 }
 0x971   : > { %v2456_v22 = vpack.c.bf16 %v2448_v17, %v2448_v17 }
 0x973   : > { %v2518_v0 = vunpack.c.l.b16 %v2456_v22 }
 0x976   : > { %v3139_v29 = vpop.eup %3138 }
 0x977   : > { %v2449_v36 = vmul.f32 %v3139_v29, %v3123_v9  ;;  %v2432_v27 = vpop.xlane.xlu2 %2431  ;;  %v2954_v9 = vld [vmem:[%s3806_s4 + $0xc] sm:$0xf]  ;;  %v940_v29 = vadd.f32 %v3148_v62, %v3457_v59 }
 0x978   : > { %3140 = vrcp.f32 %v2432_v27  ;;  %v2591_v19 = vsel %vm900_vm3, %v2954_v9, 0 }
 0x979   : > { %v2457_v6 = vpack.c.bf16 %v2449_v36, %v2449_v36  ;;  %2600 = vmatpush.bf16.msrb.mxu0 %v2591_v19 }
 0x97b   : > { %v2519_v54 = vunpack.c.l.b16 %v2457_v6 }
 0x97d   : > { %v2520_v32 = vpack.c.b16 %v2519_v54, %v2518_v0 }
 0x97e   : > { %v3141_v34 = vpop.eup %3140 }
 0x97f   : > { %v2435_v33 = vpop.xlane.xlu0 %2434  ;;  %2952 = vmatmul.msk.bf16.vlgmr.msrb.gmra.mxu2 %vm674_vm2, %v2520_v32  ;;  %v2450_v37 = vmul.f32 %v3141_v34, %v3125_v11 }
 0x980   : > { %3142 = vrcp.f32 %v2435_v33 }
 0x981   : > { %v2458_v56 = vpack.c.bf16 %v2450_v37, %v2450_v37 }
 0x983   : > { %v2546_v31 = vunpack.c.l.b16 %v2458_v56 }
 0x986   : > { %v3143_v39 = vpop.eup %3142 }
 0x987   : > { %v2451_v7 = vmul.f32 %v3143_v39, %v3127_v15 }
 0x989   : > { %v2459_v41 = vpack.c.bf16 %v2451_v7, %v2451_v7 }
 0x98b   : > { %v2547_v42 = vunpack.c.l.b16 %v2459_v41 }
 0x98d   : > { %v2548_v43 = vpack.c.b16 %v2547_v42, %v2546_v31 }
 0x98f   : > { %2953 = vmatmul.msk.bf16.vlgmr.msra.gmra.mxu3 %vm674_vm2, %v2548_v43 }
 0x9df   : > { %v2483_v44 = vpop.f32.mrf.mxu0 }
 0x9e6   : > { %v2511_v15 = vpop.f32.mrf.mxu1 }
 0x9e7   : > { %v2485_v28 = vpop.f32.mrf.mxu0 }
 0x9e8   : > { %v2572_v11 = vpack.c.bf16 %v2485_v28, %v2483_v44 }
 0x9ea   : > { %2955 = vmatmul.msk.bf16.vlgmr.msrb.gmra.mxu0 %vm563_vm1, %v2572_v11 }
 0x9ee   : > { %v2513_v48 = vpop.f32.mrf.mxu1 }
 0x9ef   : > { %v2573_v24 = vpack.c.bf16 %v2513_v48, %v2511_v15 }
 0x9fa   : > { %2956 = vmatmul.msk.bf16.gmra.mxu0 %vm563_vm1, %v2573_v24 }
 0xa02   : > { %v2539_v52 = vpop.f32.mrf.mxu2 }
 0xa0a   : > { %v2541_v46 = vpop.f32.mrf.mxu2 }
 0xa0b   : > { %v2574_v18 = vpack.c.bf16 %v2541_v46, %v2539_v52 }
 0xa0d   : > { %2957 = vmatmul.msk.bf16.gmra.mxu0 %vm563_vm1, %v2574_v18 }
 0xa12   : > { %v2567_v51 = vpop.f32.mrf.mxu3 }
 0xa1a   : > { %v2569_v57 = vpop.f32.mrf.mxu3 }
 0xa1b   : > { %v2575_v58 = vpack.c.bf16 %v2569_v57, %v2567_v51 }
 0xa1d   : > { %2958 = vmatmul.msk.bf16.gmra.mxu0 %vm563_vm1, %v2575_v58 }
 0xa67   : > { %v2602_v45 = vpop.f32.mrf.mxu0 }
 0xa68   : > { %v2622_v60 = vadd.f32 %v2602_v45, %v3708_v38 }
 0xa6a   : > { %2630 = vst.msk [vmem:[%s3762_s27] sm:$0xff] %vm389_vm0, %v2622_v60 }
 0xa6f   : > { %v2604_v3 = vpop.f32.mrf.mxu0 }
 0xa70   : > { %v2623_v13 = vadd.f32 %v2604_v3, %v2060_v8 }
 0xa72   : > { %2631 = vst.msk [vmem:[%s3762_s27 + $0x8] sm:$0xff] %vm389_vm0, %v2623_v13 }
 0xa77   : > { %v2607_v61 = vpop.f32.mrf.mxu0 }
 0xa78   : > { %v2624_v38 = vadd.f32 %v2607_v61, %v3716_v63  ;;  %v938_v63 = vadd.f32 %v3148_v62, %v3453_v50 }
 0xa7a   : > { %2632 = vst.msk [vmem:[%s3762_s27 + $0x10] sm:$0xff] %vm389_vm0, %v2624_v38  ;;  %v1501_v40 = vadd.f32 %v3588_v26, %v938_v63 }
 0xa7c   : > { %v2064_v23 = vadd.f32 %v3723_v20, %v1501_v40 }
 0xa7f   : > { %v2609_v49 = vpop.f32.mrf.mxu0 }
 0xa80   : > { %v2625_v55 = vadd.f32 %v2609_v49, %v2062_v21 }
 0xa82   : > { %2633 = vst.msk [vmem:[%s3762_s27 + $0x18] sm:$0xff] %vm389_vm0, %v2625_v55 }
 0xa8a   : > { %v2612_v5 = vpop.f32.mrf.mxu0 }
 0xa8b   : > { %v2626_v53 = vadd.f32 %v2612_v5, %v3721_v10  ;;  %v1503_v10 = vadd.f32 %v3593_v35, %v940_v29 }
 0xa8d   : > { %2634 = vst.msk [vmem:[%s3762_s27 + $0x20] sm:$0xff] %vm389_vm0, %v2626_v53  ;;  %v2066_v50 = vadd.f32 %v3728_v30, %v1503_v10 }
 0xa92   : > { %v2614_v4 = vpop.f32.mrf.mxu0 }
 0xa93   : > { %v2627_v25 = vadd.f32 %v2614_v4, %v2064_v23 }
 0xa95   : > { %2635 = vst.msk [vmem:[%s3762_s27 + $0x28] sm:$0xff] %vm389_vm0, %v2627_v25 }
 0xa9a   : > { %v2617_v16 = vpop.f32.mrf.mxu0 }
 0xa9b   : > { %v2628_v17 = vadd.f32 %v2617_v16, %v3726_v12 }
 0xa9d   : > { %2636 = vst.msk [vmem:[%s3762_s27 + $0x30] sm:$0xff] %vm389_vm0, %v2628_v17 }
 0xaa2   : > { %v2619_v22 = vpop.f32.mrf.mxu0 }
 0xaa3   : > { %v2629_v36 = vadd.f32 %v2619_v22, %v2066_v50 }
 0xaa5   : > { %2637 = vst.msk [vmem:[%s3762_s27 + $0x38] sm:$0xff] %vm389_vm0, %v2629_v36 }
 0xaa6 PF: > { %s19_s30 = sadd.s32 1, %s3155_s30  }
 0xaa7   : > { %p16_p4 = scmp.ge.s32.totalorder %s19_s30, 4  }
 0xaa9   :  { %18 = sbr.rel (!%p16_p4) target bundleno = 1 (0x1), region = 107 }

</bundles_post_ra>
